<compile_context>
chip_gen: v5e
topology: v5e:2x2
jax: 0.10.0
libtpu: 0.0.40
codegen_flags: <defaults>
</compile_context>

<pallas_src>
from functools import lru_cache, partial

import numpy as np
import jax
import jax.numpy as jnp
from jax import lax
from jax.experimental import pallas as pl
from jax.experimental.pallas import tpu as pltpu

_PI = float(np.pi)
_HALF_PI = float(np.pi / 2.0)


def _round_up(x, m):
    return ((x + m - 1) // m) * m


def _cdiv(a, b):
    return -(-a // b)


@lru_cache(maxsize=None)
def _device_info():
    """(is_v5e, is_v7, scoped_vmem_bytes) for per-generation gating."""
    try:
        kind = jax.devices()[0].device_kind.lower()
    except Exception:
        kind = ""
    is_v5e = ("v5 lite" in kind) or ("v5e" in kind) or ("v5litepod" in kind)
    is_v7 = "v7" in kind
    # v7x has 64 MiB physical VMEM -> stay at 48 MiB scoped; v5e/v6e have 128 MiB.
    vmem_bytes = (96 if (kind and not is_v7) else 48) * 1024 * 1024
    return is_v5e, is_v7, vmem_bytes


# ----------------------------------------------------------------------------
# constant matrices (built once on host, cached, stored in bf16)
# forward DFT:  X = s @ F,  F = [cos | -sin]  (L, 2L)
# inverse DFT:  Re(IFFT(Y)) = ([Yr | Yi] @ G) / L,  G = [cos ; -sin]  (2L, L)
# ----------------------------------------------------------------------------
@lru_cache(maxsize=None)
def _dft_matrix_bf16(length):
    n = np.arange(length)
    ang = 2.0 * np.pi * np.outer(n, n) / length
    f = np.concatenate([np.cos(ang), -np.sin(ang)], axis=1).astype(np.float32)
    return jnp.asarray(f, dtype=jnp.bfloat16)                      # (L, 2L)


@lru_cache(maxsize=None)
def _idft_matrix_bf16(length):
    n = np.arange(length)
    ang = 2.0 * np.pi * np.outer(n, n) / length
    f = np.concatenate([np.cos(ang), -np.sin(ang)], axis=0).astype(np.float32)
    return jnp.asarray(f, dtype=jnp.bfloat16)                      # (2L, L)


@lru_cache(maxsize=None)
def _smoothing_matrix_bf16(length, window_size):
    """Banded averaging matrix S with replicate padding: smoothed = x @ S."""
    pad = window_size // 2
    s = np.zeros((length, length), np.float32)
    inv_w = 1.0 / window_size
    for i in range(length):
        for d in range(-pad, pad + 1):
            k = min(max(i + d, 0), length - 1)
            s[k, i] += inv_w
    return jnp.asarray(s, dtype=jnp.bfloat16)                      # (L, L)


# ----------------------------------------------------------------------------
# in-kernel atan2 (torch.angle): quadrant-corrected odd minimax polynomial.
# The divide goes through the EUP reciprocal; accuracy ~1e-4 rad.
# ----------------------------------------------------------------------------
def _atan2(y, x):
    ax = jnp.abs(x)
    ay = jnp.abs(y)
    amax = jnp.maximum(ax, ay)
    amin = jnp.minimum(ax, ay)
    t = amin * pl.reciprocal(jnp.maximum(amax, 1e-30), approx=True)   # [0, 1]
    s = t * t
    u = jnp.float32(0.00282363896258175373077393)
    u = u * s + jnp.float32(-0.0159569028764963150024414)
    u = u * s + jnp.float32(0.0425049886107444763183594)
    u = u * s + jnp.float32(-0.0748900920152664184570312)
    u = u * s + jnp.float32(0.106347933411598205566406)
    u = u * s + jnp.float32(-0.142027363181114196777344)
    u = u * s + jnp.float32(0.199926957488059997558594)
    u = u * s + jnp.float32(-0.333331018686294555664062)
    r = t + t * s * u                             # atan(min/max) on [0, 1]
    r = jnp.where(ay > ax, _HALF_PI - r, r)       # atan(|y|/|x|)
    r = jnp.where(x < 0.0, _PI - r, r)            # quadrant II / III
    return jnp.where(y < 0.0, -r, r)              # sign of y


# ----------------------------------------------------------------------------
# Fused kernel
# ----------------------------------------------------------------------------
def _fused_kernel(*refs, window_size, use_mxu_smoothing):
    if use_mxu_smoothing:
        (sig2_ref, sig1_ref, smat_ref, fdft_ref, fidft_ref,
         wm_ref, bm_ref, wri_ref, bri_ref, out_ref) = refs
    else:
        (sig2_ref, sig1_ref, fdft_ref, fidft_ref,
         wm_ref, bm_ref, wri_ref, bri_ref, out_ref) = refs

    f32 = jnp.float32
    sig1 = sig1_ref[...]                          # (TB, L) f32
    sig2 = sig2_ref[...]                          # (TB, L) f32
    tb, length = sig1.shape
    pad = window_size // 2

    # ---- adaptive_smoothing_and_amplify_batch (replicate-padded box filter)
    if use_mxu_smoothing:
        # v6e/v7x: MXU has slack -> banded averaging matrix on the MXU.
        smoothed = jnp.dot(sig2.astype(jnp.bfloat16), smat_ref[...],
                           preferred_element_type=f32)
    else:
        # v5e: MXU-bound -> keep the XLU roll / VPU select path.
        lane = lax.broadcasted_iota(jnp.int32, (tb, length), 1)
        left = jnp.broadcast_to(sig2[:, 0:1], (tb, length))
        right = jnp.broadcast_to(sig2[:, length - 1:length], (tb, length))
        acc = sig2
        for d in range(1, pad + 1):
            fwd = pltpu.roll(sig2, shift=length - d, axis=1)   # x[i + d] circ.
            acc = acc + jnp.where(lane >= length - d, right, fwd)
            bwd = pltpu.roll(sig2, shift=d, axis=1)            # x[i - d] circ.
            acc = acc + jnp.where(lane < d, left, bwd)
        smoothed = acc * (1.0 / window_size)

    # enhanced branch only is used downstream (power=2)
    mean_s = jnp.mean(smoothed, axis=-1, keepdims=True)
    dev = smoothed - mean_s
    abs_dev = jnp.abs(dev)
    max_dev = jnp.max(abs_dev, axis=-1, keepdims=True)
    inv_scale = 1.5 * pl.reciprocal(max_dev + 1e-6, approx=True)   # EUP, (TB,1)
    factors = (abs_dev * inv_scale) ** 2
    enhanced = smoothed + factors * dev

    # ---- per-row normalization (torch.std default: unbiased, ddof=1)
    def _normalize(x):
        m = jnp.mean(x, axis=-1, keepdims=True)
        c = x - m
        var = jnp.sum(c * c, axis=-1, keepdims=True) * (1.0 / (length - 1))
        s = jnp.sqrt(var)
        return c * pl.reciprocal(s + 1e-8, approx=True), m, s

    s1n, mean1, std1 = _normalize(sig1)
    s2n, _, _ = _normalize(enhanced)

    # ---- forward DFT: stack both signals -> single MXU sweep of [cos | -sin]
    s_stack = jnp.concatenate([s1n, s2n], axis=0).astype(jnp.bfloat16)
    X = jnp.dot(s_stack, fdft_ref[...], preferred_element_type=f32)  # (2TB, 2L)
    xr1 = X[:tb, :length]
    xi1 = X[:tb, length:]
    xr2 = X[tb:, :length]
    xi2 = X[tb:, length:]

    sq = xr1 * xr1 + xi1 * xi1
    mag1 = sq * lax.rsqrt(sq + 1e-30)             # |FFT(signal1)|
    phase2 = _atan2(xi2, xr2)                     # angle(FFT(signal2))

    # ---- Linear layers: magnitude_mapper + fused [phase_real | phase_imag]
    adj_mag = jnp.dot(mag1.astype(jnp.bfloat16), wm_ref[...],
                      preferred_element_type=f32) + bm_ref[...]      # (TB, L)
    p = jnp.dot(phase2.astype(jnp.bfloat16), wri_ref[...],
                preferred_element_type=f32) + bri_ref[...]           # (TB, 2L)

    # lane-duplicated magnitude -> y = [adj*p_real | adj*p_imag], no slices
    adj2 = jnp.concatenate([adj_mag, adj_mag], axis=1)
    y = (adj2 * p).astype(jnp.bfloat16)

    # ---- Re(IFFT(Y)) as ONE matmul against [cos ; -sin]
    s3n = jnp.dot(y, fidft_ref[...], preferred_element_type=f32) * (1.0 / length)

    out_ref[...] = s3n * std1 + mean1


# ----------------------------------------------------------------------------
# Parameters (deterministic synthetic init; Linear weights stored pre-transposed
# so y = x @ W_t + b matches nn.Linear's y = x @ W.T + b). Weight matrices are
# kept in bf16 (f32 accumulation in-kernel); biases stay f32.
# ----------------------------------------------------------------------------
def init_params(key, seq_len):
    ks = jax.random.split(key, 6)
    scale = 0.02
    wm = jax.random.normal(ks[0], (seq_len, seq_len), jnp.float32) * scale
    bm = jax.random.normal(ks[1], (1, seq_len), jnp.float32) * scale
    wr = jax.random.normal(ks[2], (seq_len, seq_len), jnp.float32) * scale
    br = jax.random.normal(ks[3], (1, seq_len), jnp.float32) * scale
    wi = jax.random.normal(ks[4], (seq_len, seq_len), jnp.float32) * scale
    bi = jax.random.normal(ks[5], (1, seq_len), jnp.float32) * scale
    return dict(
        wm_t=wm.astype(jnp.bfloat16),                                  # (L, L)
        bm=bm,                                                         # (1, L)
        wri_t=jnp.concatenate([wr, wi], axis=1).astype(jnp.bfloat16),  # (L, 2L)
        bri=jnp.concatenate([br, bi], axis=1),                         # (1, 2L)
    )


# ----------------------------------------------------------------------------
# Wrapper
# ----------------------------------------------------------------------------
def phase_amplitude_align_net_norm(signal2, signal1, params, window_size=15):
    batch, _, length = signal1.shape
    s1 = signal1.reshape(batch, length).astype(jnp.float32)
    s2 = signal2.reshape(batch, length).astype(jnp.float32)

    is_v5e, is_v7, vmem_bytes = _device_info()
    use_mxu_smoothing = not is_v5e   # v5e is MXU-bound -> keep roll path there

    # Batch tiling: cap at 256 rows, round to 8 sublanes, minimize padding,
    # and keep >=2 grid steps on v7x (two TensorCores) when the batch allows.
    max_tb = 256
    min_tiles = 2 if (is_v7 and batch >= 256) else 1
    n_tiles = max(min_tiles, _cdiv(batch, max_tb))
    tb = _round_up(_cdiv(batch, n_tiles), 8)
    bp = tb * n_tiles
    if bp != batch:
        padn = bp - batch
        s1 = jnp.pad(s1, ((0, padn), (0, 0)))
        s2 = jnp.pad(s2, ((0, padn), (0, 0)))

    fdft = _dft_matrix_bf16(length)                     # (L, 2L)  bf16, cached
    fidft = _idft_matrix_bf16(length)                   # (2L, L)  bf16, cached

    operands = [s2, s1]
    const_shapes = []
    if use_mxu_smoothing:
        operands.append(_smoothing_matrix_bf16(length, window_size))
        const_shapes.append((length, length))
    operands += [fdft, fidft, params["wm_t"], params["bm"],
                 params["wri_t"], params["bri"]]
    const_shapes += [(length, 2 * length), (2 * length, length),
                     (length, length), (1, length),
                     (length, 2 * length), (1, 2 * length)]

    kernel = partial(_fused_kernel, window_size=window_size,
                     use_mxu_smoothing=use_mxu_smoothing)

    def _call(single_buffer_consts):
        if single_buffer_consts:
            def const_spec(shape):
                return pl.BlockSpec(shape, lambda b: (0, 0),
                                    pipeline_mode=pl.Buffered(1))
        else:
            def const_spec(shape):
                return pl.BlockSpec(shape, lambda b: (0, 0))
        in_specs = [pl.BlockSpec((tb, length), lambda b: (b, 0)),   # signal2
                    pl.BlockSpec((tb, length), lambda b: (b, 0))]   # signal1
        in_specs += [const_spec(s) for s in const_shapes]
        return pl.pallas_call(
            kernel,
            out_shape=jax.ShapeDtypeStruct((bp, length), jnp.float32),
            grid=(n_tiles,),
            in_specs=in_specs,
            out_specs=pl.BlockSpec((tb, length), lambda b: (b, 0)),
            compiler_params=pltpu.CompilerParams(
                dimension_semantics=("parallel",),
                vmem_limit_bytes=vmem_bytes,
            ),
        )(*operands)

    try:
        # Constants single-buffered (constant index maps never re-fetch; the
        # default double buffer only wastes VMEM).
        out = _call(True)
    except Exception:
        # Fallback for jax versions without BlockSpec.pipeline_mode support.
        out = _call(False)

    return out[:batch].reshape(batch, 1, length)


# ----------------------------------------------------------------------------
# Pure-JAX reference (f32, jnp.fft) for a loose sanity check.
# ----------------------------------------------------------------------------
def _reference(signal2, signal1, params, window_size=15):
    s1 = signal1[:, 0, :].astype(jnp.float32)
    s2 = signal2[:, 0, :].astype(jnp.float32)
    L = s1.shape[-1]
    pad = window_size // 2
    s2p = jnp.concatenate(
        [jnp.repeat(s2[:, :1], pad, axis=1), s2,
         jnp.repeat(s2[:, -1:], pad, axis=1)], axis=1)
    sm = jnp.mean(jnp.stack([s2p[:, i:i + L] for i in range(window_size)], 0), 0)
    mean_s = sm.mean(-1, keepdims=True)
    dev = sm - mean_s
    maxd = jnp.max(jnp.abs(dev), -1, keepdims=True)
    enh = sm + ((jnp.abs(dev) / ((maxd + 1e-6) / 1.5)) ** 2) * dev

    def norm(x):
        m = x.mean(-1, keepdims=True)
        s = jnp.std(x, axis=-1, ddof=1, keepdims=True)
        return (x - m) / (s + 1e-8), m, s

    s1n, m1, sd1 = norm(s1)
    s2n, _, _ = norm(enh)
    f1 = jnp.fft.fft(s1n, axis=-1)
    f2 = jnp.fft.fft(s2n, axis=-1)
    mag1 = jnp.abs(f1)
    ph2 = jnp.angle(f2)
    adj = mag1 @ params["wm_t"].astype(jnp.float32) + params["bm"]
    p = ph2 @ params["wri_t"].astype(jnp.float32) + params["bri"]
    pr, pi = p[:, :L], p[:, L:]
    y = (adj * pr) + 1j * (adj * pi)
    s3n = jnp.real(jnp.fft.ifft(y, axis=-1))
    return (s3n * sd1 + m1)[:, None, :]


if __name__ == "__main__":
    B, L = 2, 128  # seq_len = 128 (module default 768, scaled down for the demo)
    key = jax.random.PRNGKey(0)
    k_sig2, k_sig1, k_par = jax.random.split(key, 3)
    signal2 = jax.random.normal(k_sig2, (B, 1, L), jnp.float32)
    signal1 = jax.random.normal(k_sig1, (B, 1, L), jnp.float32)
    params = init_params(k_par, L)

    out = phase_amplitude_align_net_norm(signal2, signal1, params)
    out = jax.block_until_ready(out)
    assert out.shape == (B, 1, L) and out.dtype == jnp.float32
    assert bool(jnp.all(jnp.isfinite(out)))

    # Loose sanity check vs an f32 / exact-FFT reference. Tolerance is generous
    # because the kernel uses bf16 DFT/weight/smoothing matrices, EUP-approx
    # reciprocals, and angle() of near-zero FFT bins is ill-conditioned; this
    # only guards against gross math/layout bugs.
    ref = _reference(signal2, signal1, params)
    err = float(jnp.max(jnp.abs(out - ref)))
    assert err < 0.5, f"max abs error vs reference: {err}"

    print("KERNEL_OK")
</pallas_src>

<mosaic_0001>
module attributes {stable_mosaic.version = 11 : i64} {
  func.func @_fused_kernel(%arg0: i32, %arg1: memref<8x128xf32, #tpu.memory_space<vmem>>, %arg2: memref<8x128xf32, #tpu.memory_space<vmem>>, %arg3: memref<128x128xbf16, #tpu.memory_space<vmem>>, %arg4: memref<128x256xbf16, #tpu.memory_space<vmem>>, %arg5: memref<256x128xbf16, #tpu.memory_space<vmem>>, %arg6: memref<128x128xbf16, #tpu.memory_space<vmem>>, %arg7: memref<1x128xf32, #tpu.memory_space<vmem>>, %arg8: memref<128x256xbf16, #tpu.memory_space<vmem>>, %arg9: memref<1x256xf32, #tpu.memory_space<vmem>>, %arg10: memref<8x128xf32, #tpu.memory_space<vmem>>) attributes {dimension_semantics = [#tpu.dimension_semantics<parallel>], iteration_bounds = array<i64: 1>, scalar_prefetch = 0 : i64, scratch_operands = 0 : i64, tpu.core_type = #tpu.core_type<tc>, window_params = [{transform_indices = @transform_0, window_bounds = array<i64: 8, 128>}, {transform_indices = @transform_1, window_bounds = array<i64: 8, 128>}, {pipeline_mode = #tpu.pipeline_mode<synchronous>, transform_indices = @transform_2, window_bounds = array<i64: 128, 128>}, {pipeline_mode = #tpu.pipeline_mode<synchronous>, transform_indices = @transform_3, window_bounds = array<i64: 128, 256>}, {pipeline_mode = #tpu.pipeline_mode<synchronous>, transform_indices = @transform_4, window_bounds = array<i64: 256, 128>}, {pipeline_mode = #tpu.pipeline_mode<synchronous>, transform_indices = @transform_5, window_bounds = array<i64: 128, 128>}, {pipeline_mode = #tpu.pipeline_mode<synchronous>, transform_indices = @transform_6, window_bounds = array<i64: 1, 128>}, {pipeline_mode = #tpu.pipeline_mode<synchronous>, transform_indices = @transform_7, window_bounds = array<i64: 128, 256>}, {pipeline_mode = #tpu.pipeline_mode<synchronous>, transform_indices = @transform_8, window_bounds = array<i64: 1, 256>}, {transform_indices = @transform_9, window_bounds = array<i64: 8, 128>}]} {
    %c0 = arith.constant 0 : index
    %c0_0 = arith.constant 0 : index
    %0 = vector.load %arg2[%c0, %c0_0] : memref<8x128xf32, #tpu.memory_space<vmem>>, vector<8x128xf32>
    %c0_1 = arith.constant 0 : index
    %c0_2 = arith.constant 0 : index
    %1 = vector.load %arg1[%c0_1, %c0_2] : memref<8x128xf32, #tpu.memory_space<vmem>>, vector<8x128xf32>
    %2 = arith.truncf %1 : vector<8x128xf32> to vector<8x128xbf16>
    %c0_3 = arith.constant 0 : index
    %c0_4 = arith.constant 0 : index
    %3 = vector.load %arg3[%c0_3, %c0_4] : memref<128x128xbf16, #tpu.memory_space<vmem>>, vector<128x128xbf16>
    %cst = arith.constant dense<0.000000e+00> : vector<8x128xf32>
    %4 = tpu.matmul %2, %3, %cst {dimension_numbers = #tpu.dot_dimension_numbers<[1], [0], [0], [1], [0, 0, 1, 1], [], []>} : vector<8x128xbf16>, vector<128x128xbf16>, vector<8x128xf32> -> vector<8x128xf32>
    %cst_5 = arith.constant dense<0.000000e+00> : vector<8xf32>
    %5 = vector.multi_reduction <add>, %4, %cst_5 [1] : vector<8x128xf32> to vector<8xf32>
    %6 = vector.shape_cast %5 : vector<8xf32> to vector<8x1xf32>
    %cst_6 = arith.constant 1.280000e+02 : f32
    %7 = vector.broadcast %cst_6 : f32 to vector<8x1xf32>
    %8 = arith.divf %6, %7 : vector<8x1xf32>
    %9 = vector.broadcast %8 : vector<8x1xf32> to vector<8x128xf32>
    %10 = arith.subf %4, %9 : vector<8x128xf32>
    %11 = math.absf %10 : vector<8x128xf32>
    %cst_7 = arith.constant dense<0xFF800000> : vector<8xf32>
    %12 = vector.multi_reduction <maximumf>, %11, %cst_7 [1] : vector<8x128xf32> to vector<8xf32>
    %13 = vector.shape_cast %12 : vector<8xf32> to vector<8x1xf32>
    %cst_8 = arith.constant 9.99999997E-7 : f32
    %14 = vector.broadcast %cst_8 : f32 to vector<8x1xf32>
    %15 = arith.addf %13, %14 : vector<8x1xf32>
    %16 = tpu.reciprocal %15 {approx = true} : vector<8x1xf32> -> vector<8x1xf32>
    %cst_9 = arith.constant 1.500000e+00 : f32
    %17 = vector.broadcast %cst_9 : f32 to vector<8x1xf32>
    %18 = arith.mulf %17, %16 : vector<8x1xf32>
    %19 = vector.broadcast %18 : vector<8x1xf32> to vector<8x128xf32>
    %20 = arith.mulf %11, %19 : vector<8x128xf32>
    %21 = arith.mulf %20, %20 : vector<8x128xf32>
    %22 = arith.mulf %21, %10 : vector<8x128xf32>
    %23 = arith.addf %4, %22 : vector<8x128xf32>
    %cst_10 = arith.constant dense<0.000000e+00> : vector<8xf32>
    %24 = vector.multi_reduction <add>, %0, %cst_10 [1] : vector<8x128xf32> to vector<8xf32>
    %25 = vector.shape_cast %24 : vector<8xf32> to vector<8x1xf32>
    %cst_11 = arith.constant 1.280000e+02 : f32
    %26 = vector.broadcast %cst_11 : f32 to vector<8x1xf32>
    %27 = arith.divf %25, %26 : vector<8x1xf32>
    %28 = vector.broadcast %27 : vector<8x1xf32> to vector<8x128xf32>
    %29 = arith.subf %0, %28 : vector<8x128xf32>
    %30 = arith.mulf %29, %29 : vector<8x128xf32>
    %cst_12 = arith.constant dense<0.000000e+00> : vector<8xf32>
    %31 = vector.multi_reduction <add>, %30, %cst_12 [1] : vector<8x128xf32> to vector<8xf32>
    %32 = vector.shape_cast %31 : vector<8xf32> to vector<8x1xf32>
    %cst_13 = arith.constant 0.00787401571 : f32
    %33 = vector.broadcast %cst_13 : f32 to vector<8x1xf32>
    %34 = arith.mulf %32, %33 : vector<8x1xf32>
    %35 = math.sqrt %34 : vector<8x1xf32>
    %cst_14 = arith.constant 9.99999993E-9 : f32
    %36 = vector.broadcast %cst_14 : f32 to vector<8x1xf32>
    %37 = arith.addf %35, %36 : vector<8x1xf32>
    %38 = tpu.reciprocal %37 {approx = true} : vector<8x1xf32> -> vector<8x1xf32>
    %39 = vector.broadcast %38 : vector<8x1xf32> to vector<8x128xf32>
    %40 = arith.mulf %29, %39 : vector<8x128xf32>
    %cst_15 = arith.constant dense<0.000000e+00> : vector<8xf32>
    %41 = vector.multi_reduction <add>, %23, %cst_15 [1] : vector<8x128xf32> to vector<8xf32>
    %42 = vector.shape_cast %41 : vector<8xf32> to vector<8x1xf32>
    %cst_16 = arith.constant 1.280000e+02 : f32
    %43 = vector.broadcast %cst_16 : f32 to vector<8x1xf32>
    %44 = arith.divf %42, %43 : vector<8x1xf32>
    %45 = vector.broadcast %44 : vector<8x1xf32> to vector<8x128xf32>
    %46 = arith.subf %23, %45 : vector<8x128xf32>
    %47 = arith.mulf %46, %46 : vector<8x128xf32>
    %cst_17 = arith.constant dense<0.000000e+00> : vector<8xf32>
    %48 = vector.multi_reduction <add>, %47, %cst_17 [1] : vector<8x128xf32> to vector<8xf32>
    %49 = vector.shape_cast %48 : vector<8xf32> to vector<8x1xf32>
    %cst_18 = arith.constant 0.00787401571 : f32
    %50 = vector.broadcast %cst_18 : f32 to vector<8x1xf32>
    %51 = arith.mulf %49, %50 : vector<8x1xf32>
    %52 = math.sqrt %51 : vector<8x1xf32>
    %cst_19 = arith.constant 9.99999993E-9 : f32
    %53 = vector.broadcast %cst_19 : f32 to vector<8x1xf32>
    %54 = arith.addf %52, %53 : vector<8x1xf32>
    %55 = tpu.reciprocal %54 {approx = true} : vector<8x1xf32> -> vector<8x1xf32>
    %56 = vector.broadcast %55 : vector<8x1xf32> to vector<8x128xf32>
    %57 = arith.mulf %46, %56 : vector<8x128xf32>
    %58 = tpu.concatenate %40, %57 in 0 : vector<8x128xf32>, vector<8x128xf32> -> vector<16x128xf32>
    %59 = arith.truncf %58 : vector<16x128xf32> to vector<16x128xbf16>
    %c0_20 = arith.constant 0 : index
    %c0_21 = arith.constant 0 : index
    %60 = vector.load %arg4[%c0_20, %c0_21] : memref<128x256xbf16, #tpu.memory_space<vmem>>, vector<128x256xbf16>
    %cst_22 = arith.constant dense<0.000000e+00> : vector<16x256xf32>
    %61 = tpu.matmul %59, %60, %cst_22 {dimension_numbers = #tpu.dot_dimension_numbers<[1], [0], [0], [1], [0, 0, 1, 1], [], []>} : vector<16x128xbf16>, vector<128x256xbf16>, vector<16x256xf32> -> vector<16x256xf32>
    %62 = vector.extract_strided_slice %61 {offsets = [0, 0], sizes = [8, 128], strides = [1, 1]} : vector<16x256xf32> to vector<8x128xf32>
    %63 = vector.extract_strided_slice %61 {offsets = [0, 128], sizes = [8, 128], strides = [1, 1]} : vector<16x256xf32> to vector<8x128xf32>
    %64 = vector.extract_strided_slice %61 {offsets = [8, 0], sizes = [8, 128], strides = [1, 1]} : vector<16x256xf32> to vector<8x128xf32>
    %65 = vector.extract_strided_slice %61 {offsets = [8, 128], sizes = [8, 128], strides = [1, 1]} : vector<16x256xf32> to vector<8x128xf32>
    %66 = arith.mulf %62, %62 : vector<8x128xf32>
    %67 = arith.mulf %63, %63 : vector<8x128xf32>
    %68 = arith.addf %66, %67 : vector<8x128xf32>
    %cst_23 = arith.constant 1.000000e-30 : f32
    %69 = vector.broadcast %cst_23 : f32 to vector<8x128xf32>
    %70 = arith.addf %68, %69 : vector<8x128xf32>
    %71 = math.rsqrt %70 : vector<8x128xf32>
    %72 = arith.mulf %68, %71 : vector<8x128xf32>
    %73 = math.absf %64 : vector<8x128xf32>
    %74 = math.absf %65 : vector<8x128xf32>
    %75 = arith.maximumf %73, %74 : vector<8x128xf32>
    %76 = arith.minimumf %73, %74 : vector<8x128xf32>
    %cst_24 = arith.constant 1.000000e-30 : f32
    %77 = vector.broadcast %cst_24 : f32 to vector<8x128xf32>
    %78 = arith.maximumf %75, %77 : vector<8x128xf32>
    %79 = tpu.reciprocal %78 {approx = true} : vector<8x128xf32> -> vector<8x128xf32>
    %80 = arith.mulf %76, %79 : vector<8x128xf32>
    %81 = arith.mulf %80, %80 : vector<8x128xf32>
    %cst_25 = arith.constant 0.00282363896 : f32
    %82 = vector.broadcast %cst_25 : f32 to vector<8x128xf32>
    %83 = arith.mulf %82, %81 : vector<8x128xf32>
    %cst_26 = arith.constant -0.0159569029 : f32
    %84 = vector.broadcast %cst_26 : f32 to vector<8x128xf32>
    %85 = arith.addf %83, %84 : vector<8x128xf32>
    %86 = arith.mulf %85, %81 : vector<8x128xf32>
    %cst_27 = arith.constant 0.0425049886 : f32
    %87 = vector.broadcast %cst_27 : f32 to vector<8x128xf32>
    %88 = arith.addf %86, %87 : vector<8x128xf32>
    %89 = arith.mulf %88, %81 : vector<8x128xf32>
    %cst_28 = arith.constant -0.074890092 : f32
    %90 = vector.broadcast %cst_28 : f32 to vector<8x128xf32>
    %91 = arith.addf %89, %90 : vector<8x128xf32>
    %92 = arith.mulf %91, %81 : vector<8x128xf32>
    %cst_29 = arith.constant 0.106347933 : f32
    %93 = vector.broadcast %cst_29 : f32 to vector<8x128xf32>
    %94 = arith.addf %92, %93 : vector<8x128xf32>
    %95 = arith.mulf %94, %81 : vector<8x128xf32>
    %cst_30 = arith.constant -0.142027363 : f32
    %96 = vector.broadcast %cst_30 : f32 to vector<8x128xf32>
    %97 = arith.addf %95, %96 : vector<8x128xf32>
    %98 = arith.mulf %97, %81 : vector<8x128xf32>
    %cst_31 = arith.constant 0.199926957 : f32
    %99 = vector.broadcast %cst_31 : f32 to vector<8x128xf32>
    %100 = arith.addf %98, %99 : vector<8x128xf32>
    %101 = arith.mulf %100, %81 : vector<8x128xf32>
    %cst_32 = arith.constant -0.333331019 : f32
    %102 = vector.broadcast %cst_32 : f32 to vector<8x128xf32>
    %103 = arith.addf %101, %102 : vector<8x128xf32>
    %104 = arith.mulf %80, %81 : vector<8x128xf32>
    %105 = arith.mulf %104, %103 : vector<8x128xf32>
    %106 = arith.addf %80, %105 : vector<8x128xf32>
    %107 = arith.cmpf ogt, %74, %73 : vector<8x128xf32>
    %cst_33 = arith.constant 1.57079637 : f32
    %108 = vector.broadcast %cst_33 : f32 to vector<8x128xf32>
    %109 = arith.subf %108, %106 : vector<8x128xf32>
    %110 = arith.select %107, %109, %106 : vector<8x128xi1>, vector<8x128xf32>
    %cst_34 = arith.constant 0.000000e+00 : f32
    %111 = vector.broadcast %cst_34 : f32 to vector<8x128xf32>
    %112 = arith.cmpf olt, %64, %111 : vector<8x128xf32>
    %cst_35 = arith.constant 3.14159274 : f32
    %113 = vector.broadcast %cst_35 : f32 to vector<8x128xf32>
    %114 = arith.subf %113, %110 : vector<8x128xf32>
    %115 = arith.select %112, %114, %110 : vector<8x128xi1>, vector<8x128xf32>
    %cst_36 = arith.constant 0.000000e+00 : f32
    %116 = vector.broadcast %cst_36 : f32 to vector<8x128xf32>
    %117 = arith.cmpf olt, %65, %116 : vector<8x128xf32>
    %cst_37 = arith.constant 0.000000e+00 : f32
    %118 = vector.broadcast %cst_37 : f32 to vector<8x128xf32>
    %119 = arith.subf %118, %115 : vector<8x128xf32>
    %120 = arith.select %117, %119, %115 : vector<8x128xi1>, vector<8x128xf32>
    %121 = arith.truncf %72 : vector<8x128xf32> to vector<8x128xbf16>
    %c0_38 = arith.constant 0 : index
    %c0_39 = arith.constant 0 : index
    %122 = vector.load %arg6[%c0_38, %c0_39] : memref<128x128xbf16, #tpu.memory_space<vmem>>, vector<128x128xbf16>
    %cst_40 = arith.constant dense<0.000000e+00> : vector<8x128xf32>
    %123 = tpu.matmul %121, %122, %cst_40 {dimension_numbers = #tpu.dot_dimension_numbers<[1], [0], [0], [1], [0, 0, 1, 1], [], []>} : vector<8x128xbf16>, vector<128x128xbf16>, vector<8x128xf32> -> vector<8x128xf32>
    %c0_41 = arith.constant 0 : index
    %c0_42 = arith.constant 0 : index
    %124 = vector.load %arg7[%c0_41, %c0_42] : memref<1x128xf32, #tpu.memory_space<vmem>>, vector<1x128xf32>
    %125 = vector.broadcast %124 : vector<1x128xf32> to vector<8x128xf32>
    %126 = arith.addf %123, %125 : vector<8x128xf32>
    %127 = arith.truncf %120 : vector<8x128xf32> to vector<8x128xbf16>
    %c0_43 = arith.constant 0 : index
    %c0_44 = arith.constant 0 : index
    %128 = vector.load %arg8[%c0_43, %c0_44] : memref<128x256xbf16, #tpu.memory_space<vmem>>, vector<128x256xbf16>
    %cst_45 = arith.constant dense<0.000000e+00> : vector<8x256xf32>
    %129 = tpu.matmul %127, %128, %cst_45 {dimension_numbers = #tpu.dot_dimension_numbers<[1], [0], [0], [1], [0, 0, 1, 1], [], []>} : vector<8x128xbf16>, vector<128x256xbf16>, vector<8x256xf32> -> vector<8x256xf32>
    %c0_46 = arith.constant 0 : index
    %c0_47 = arith.constant 0 : index
    %130 = vector.load %arg9[%c0_46, %c0_47] : memref<1x256xf32, #tpu.memory_space<vmem>>, vector<1x256xf32>
    %131 = vector.broadcast %130 : vector<1x256xf32> to vector<8x256xf32>
    %132 = arith.addf %129, %131 : vector<8x256xf32>
    %133 = tpu.concatenate %126, %126 in 1 : vector<8x128xf32>, vector<8x128xf32> -> vector<8x256xf32>
    %134 = arith.mulf %133, %132 : vector<8x256xf32>
    %135 = arith.truncf %134 : vector<8x256xf32> to vector<8x256xbf16>
    %c0_48 = arith.constant 0 : index
    %c0_49 = arith.constant 0 : index
    %136 = vector.load %arg5[%c0_48, %c0_49] : memref<256x128xbf16, #tpu.memory_space<vmem>>, vector<256x128xbf16>
    %cst_50 = arith.constant dense<0.000000e+00> : vector<8x128xf32>
    %137 = tpu.matmul %135, %136, %cst_50 {dimension_numbers = #tpu.dot_dimension_numbers<[1], [0], [0], [1], [0, 0, 1, 1], [], []>} : vector<8x256xbf16>, vector<256x128xbf16>, vector<8x128xf32> -> vector<8x128xf32>
    %cst_51 = arith.constant 7.812500e-03 : f32
    %138 = vector.broadcast %cst_51 : f32 to vector<8x128xf32>
    %139 = arith.mulf %137, %138 : vector<8x128xf32>
    %140 = vector.broadcast %35 : vector<8x1xf32> to vector<8x128xf32>
    %141 = arith.mulf %139, %140 : vector<8x128xf32>
    %142 = vector.broadcast %27 : vector<8x1xf32> to vector<8x128xf32>
    %143 = arith.addf %141, %142 : vector<8x128xf32>
    %c0_52 = arith.constant 0 : index
    %c0_53 = arith.constant 0 : index
    %144 = vector.load %arg10[%c0_52, %c0_53] : memref<8x128xf32, #tpu.memory_space<vmem>>, vector<8x128xf32>
    tpu.vector_store %arg10[%c0_52, %c0_53], %143 {strides = array<i32>} : memref<8x128xf32, #tpu.memory_space<vmem>>, vector<8x128xf32>,
    return
  }
  func.func @transform_0(%arg0: i32) -> (i32, i32) {
    %c0_i32 = arith.constant 0 : i32
    %c0_i32_0 = arith.constant 0 : i32
    return %arg0, %c0_i32 : i32, i32
  }
  func.func @transform_1(%arg0: i32) -> (i32, i32) {
    %c0_i32 = arith.constant 0 : i32
    %c0_i32_0 = arith.constant 0 : i32
    return %arg0, %c0_i32 : i32, i32
  }
  func.func @transform_2(%arg0: i32) -> (i32, i32) {
    %c0_i32 = arith.constant 0 : i32
    %c0_i32_0 = arith.constant 0 : i32
    %c0_i32_1 = arith.constant 0 : i32
    return %c0_i32, %c0_i32_0 : i32, i32
  }
  func.func @transform_3(%arg0: i32) -> (i32, i32) {
    %c0_i32 = arith.constant 0 : i32
    %c0_i32_0 = arith.constant 0 : i32
    %c0_i32_1 = arith.constant 0 : i32
    return %c0_i32, %c0_i32_0 : i32, i32
  }
  func.func @transform_4(%arg0: i32) -> (i32, i32) {
    %c0_i32 = arith.constant 0 : i32
    %c0_i32_0 = arith.constant 0 : i32
    %c0_i32_1 = arith.constant 0 : i32
    return %c0_i32, %c0_i32_0 : i32, i32
  }
  func.func @transform_5(%arg0: i32) -> (i32, i32) {
    %c0_i32 = arith.constant 0 : i32
    %c0_i32_0 = arith.constant 0 : i32
    %c0_i32_1 = arith.constant 0 : i32
    return %c0_i32, %c0_i32_0 : i32, i32
  }
  func.func @transform_6(%arg0: i32) -> (i32, i32) {
    %c0_i32 = arith.constant 0 : i32
    %c0_i32_0 = arith.constant 0 : i32
    %c0_i32_1 = arith.constant 0 : i32
    return %c0_i32, %c0_i32_0 : i32, i32
  }
  func.func @transform_7(%arg0: i32) -> (i32, i32) {
    %c0_i32 = arith.constant 0 : i32
    %c0_i32_0 = arith.constant 0 : i32
    %c0_i32_1 = arith.constant 0 : i32
    return %c0_i32, %c0_i32_0 : i32, i32
  }
  func.func @transform_8(%arg0: i32) -> (i32, i32) {
    %c0_i32 = arith.constant 0 : i32
    %c0_i32_0 = arith.constant 0 : i32
    %c0_i32_1 = arith.constant 0 : i32
    return %c0_i32, %c0_i32_0 : i32, i32
  }
  func.func @transform_9(%arg0: i32) -> (i32, i32) {
    %c0_i32 = arith.constant 0 : i32
    %c0_i32_0 = arith.constant 0 : i32
    return %arg0, %c0_i32 : i32, i32
  }
}

module attributes {stable_mosaic.version = 11 : i64} {
  func.func @_fused_kernel(%arg0: i32, %arg1: memref<8x128xf32, #tpu.memory_space<vmem>>, %arg2: memref<8x128xf32, #tpu.memory_space<vmem>>, %arg3: memref<128x128xbf16, #tpu.memory_space<vmem>>, %arg4: memref<128x256xbf16, #tpu.memory_space<vmem>>, %arg5: memref<256x128xbf16, #tpu.memory_space<vmem>>, %arg6: memref<128x128xbf16, #tpu.memory_space<vmem>>, %arg7: memref<1x128xf32, #tpu.memory_space<vmem>>, %arg8: memref<128x256xbf16, #tpu.memory_space<vmem>>, %arg9: memref<1x256xf32, #tpu.memory_space<vmem>>, %arg10: memref<8x128xf32, #tpu.memory_space<vmem>>) attributes {dimension_semantics = [#tpu.dimension_semantics<parallel>], iteration_bounds = array<i64: 1>, scalar_prefetch = 0 : i64, scratch_operands = 0 : i64, tpu.core_type = #tpu.core_type<tc>, window_params = [{transform_indices = @transform_0, window_bounds = array<i64: 8, 128>}, {transform_indices = @transform_1, window_bounds = array<i64: 8, 128>}, {pipeline_mode = #tpu.pipeline_mode<synchronous>, transform_indices = @transform_2, window_bounds = array<i64: 128, 128>}, {pipeline_mode = #tpu.pipeline_mode<synchronous>, transform_indices = @transform_3, window_bounds = array<i64: 128, 256>}, {pipeline_mode = #tpu.pipeline_mode<synchronous>, transform_indices = @transform_4, window_bounds = array<i64: 256, 128>}, {pipeline_mode = #tpu.pipeline_mode<synchronous>, transform_indices = @transform_5, window_bounds = array<i64: 128, 128>}, {pipeline_mode = #tpu.pipeline_mode<synchronous>, transform_indices = @transform_6, window_bounds = array<i64: 1, 128>}, {pipeline_mode = #tpu.pipeline_mode<synchronous>, transform_indices = @transform_7, window_bounds = array<i64: 128, 256>}, {pipeline_mode = #tpu.pipeline_mode<synchronous>, transform_indices = @transform_8, window_bounds = array<i64: 1, 256>}, {transform_indices = @transform_9, window_bounds = array<i64: 8, 128>}]} {
    %c0 = arith.constant 0 : index
    %c0_0 = arith.constant 0 : index
    %0 = vector.load %arg2[%c0, %c0_0] : memref<8x128xf32, #tpu.memory_space<vmem>>, vector<8x128xf32>
    %c0_1 = arith.constant 0 : index
    %c0_2 = arith.constant 0 : index
    %1 = vector.load %arg1[%c0_1, %c0_2] : memref<8x128xf32, #tpu.memory_space<vmem>>, vector<8x128xf32>
    %2 = arith.truncf %1 : vector<8x128xf32> to vector<8x128xbf16>
    %c0_3 = arith.constant 0 : index
    %c0_4 = arith.constant 0 : index
    %3 = vector.load %arg3[%c0_3, %c0_4] : memref<128x128xbf16, #tpu.memory_space<vmem>>, vector<128x128xbf16>
    %cst = arith.constant dense<0.000000e+00> : vector<8x128xf32>
    %4 = tpu.matmul %2, %3, %cst {dimension_numbers = #tpu.dot_dimension_numbers<[1], [0], [0], [1], [0, 0, 1, 1], [], []>} : vector<8x128xbf16>, vector<128x128xbf16>, vector<8x128xf32> -> vector<8x128xf32>
    %cst_5 = arith.constant dense<0.000000e+00> : vector<8xf32>
    %5 = vector.multi_reduction <add>, %4, %cst_5 [1] : vector<8x128xf32> to vector<8xf32>
    %6 = vector.shape_cast %5 : vector<8xf32> to vector<8x1xf32>
    %cst_6 = arith.constant 1.280000e+02 : f32
    %7 = vector.broadcast %cst_6 : f32 to vector<8x1xf32>
    %8 = arith.divf %6, %7 : vector<8x1xf32>
    %9 = vector.broadcast %8 : vector<8x1xf32> to vector<8x128xf32>
    %10 = arith.subf %4, %9 : vector<8x128xf32>
    %11 = math.absf %10 : vector<8x128xf32>
    %cst_7 = arith.constant dense<0xFF800000> : vector<8xf32>
    %12 = vector.multi_reduction <maximumf>, %11, %cst_7 [1] : vector<8x128xf32> to vector<8xf32>
    %13 = vector.shape_cast %12 : vector<8xf32> to vector<8x1xf32>
    %cst_8 = arith.constant 9.99999997E-7 : f32
    %14 = vector.broadcast %cst_8 : f32 to vector<8x1xf32>
    %15 = arith.addf %13, %14 : vector<8x1xf32>
    %16 = tpu.reciprocal %15 {approx = true} : vector<8x1xf32> -> vector<8x1xf32>
    %cst_9 = arith.constant 1.500000e+00 : f32
    %17 = vector.broadcast %cst_9 : f32 to vector<8x1xf32>
    %18 = arith.mulf %17, %16 : vector<8x1xf32>
    %19 = vector.broadcast %18 : vector<8x1xf32> to vector<8x128xf32>
    %20 = arith.mulf %11, %19 : vector<8x128xf32>
    %21 = arith.mulf %20, %20 : vector<8x128xf32>
    %22 = arith.mulf %21, %10 : vector<8x128xf32>
    %23 = arith.addf %4, %22 : vector<8x128xf32>
    %cst_10 = arith.constant dense<0.000000e+00> : vector<8xf32>
    %24 = vector.multi_reduction <add>, %0, %cst_10 [1] : vector<8x128xf32> to vector<8xf32>
    %25 = vector.shape_cast %24 : vector<8xf32> to vector<8x1xf32>
    %cst_11 = arith.constant 1.280000e+02 : f32
    %26 = vector.broadcast %cst_11 : f32 to vector<8x1xf32>
    %27 = arith.divf %25, %26 : vector<8x1xf32>
    %28 = vector.broadcast %27 : vector<8x1xf32> to vector<8x128xf32>
    %29 = arith.subf %0, %28 : vector<8x128xf32>
    %30 = arith.mulf %29, %29 : vector<8x128xf32>
    %cst_12 = arith.constant dense<0.000000e+00> : vector<8xf32>
    %31 = vector.multi_reduction <add>, %30, %cst_12 [1] : vector<8x128xf32> to vector<8xf32>
    %32 = vector.shape_cast %31 : vector<8xf32> to vector<8x1xf32>
    %cst_13 = arith.constant 0.00787401571 : f32
    %33 = vector.broadcast %cst_13 : f32 to vector<8x1xf32>
    %34 = arith.mulf %32, %33 : vector<8x1xf32>
    %35 = math.sqrt %34 : vector<8x1xf32>
    %cst_14 = arith.constant 9.99999993E-9 : f32
    %36 = vector.broadcast %cst_14 : f32 to vector<8x1xf32>
    %37 = arith.addf %35, %36 : vector<8x1xf32>
    %38 = tpu.reciprocal %37 {approx = true} : vector<8x1xf32> -> vector<8x1xf32>
    %39 = vector.broadcast %38 : vector<8x1xf32> to vector<8x128xf32>
    %40 = arith.mulf %29, %39 : vector<8x128xf32>
    %cst_15 = arith.constant dense<0.000000e+00> : vector<8xf32>
    %41 = vector.multi_reduction <add>, %23, %cst_15 [1] : vector<8x128xf32> to vector<8xf32>
    %42 = vector.shape_cast %41 : vector<8xf32> to vector<8x1xf32>
    %cst_16 = arith.constant 1.280000e+02 : f32
    %43 = vector.broadcast %cst_16 : f32 to vector<8x1xf32>
    %44 = arith.divf %42, %43 : vector<8x1xf32>
    %45 = vector.broadcast %44 : vector<8x1xf32> to vector<8x128xf32>
    %46 = arith.subf %23, %45 : vector<8x128xf32>
    %47 = arith.mulf %46, %46 : vector<8x128xf32>
    %cst_17 = arith.constant dense<0.000000e+00> : vector<8xf32>
    %48 = vector.multi_reduction <add>, %47, %cst_17 [1] : vector<8x128xf32> to vector<8xf32>
    %49 = vector.shape_cast %48 : vector<8xf32> to vector<8x1xf32>
    %cst_18 = arith.constant 0.00787401571 : f32
    %50 = vector.broadcast %cst_18 : f32 to vector<8x1xf32>
    %51 = arith.mulf %49, %50 : vector<8x1xf32>
    %52 = math.sqrt %51 : vector<8x1xf32>
    %cst_19 = arith.constant 9.99999993E-9 : f32
    %53 = vector.broadcast %cst_19 : f32 to vector<8x1xf32>
    %54 = arith.addf %52, %53 : vector<8x1xf32>
    %55 = tpu.reciprocal %54 {approx = true} : vector<8x1xf32> -> vector<8x1xf32>
    %56 = vector.broadcast %55 : vector<8x1xf32> to vector<8x128xf32>
    %57 = arith.mulf %46, %56 : vector<8x128xf32>
    %58 = tpu.concatenate %40, %57 in 0 : vector<8x128xf32>, vector<8x128xf32> -> vector<16x128xf32>
    %59 = arith.truncf %58 : vector<16x128xf32> to vector<16x128xbf16>
    %c0_20 = arith.constant 0 : index
    %c0_21 = arith.constant 0 : index
    %60 = vector.load %arg4[%c0_20, %c0_21] : memref<128x256xbf16, #tpu.memory_space<vmem>>, vector<128x256xbf16>
    %cst_22 = arith.constant dense<0.000000e+00> : vector<16x256xf32>
    %61 = tpu.matmul %59, %60, %cst_22 {dimension_numbers = #tpu.dot_dimension_numbers<[1], [0], [0], [1], [0, 0, 1, 1], [], []>} : vector<16x128xbf16>, vector<128x256xbf16>, vector<16x256xf32> -> vector<16x256xf32>
    %62 = vector.extract_strided_slice %61 {offsets = [0, 0], sizes = [8, 128], strides = [1, 1]} : vector<16x256xf32> to vector<8x128xf32>
    %63 = vector.extract_strided_slice %61 {offsets = [0, 128], sizes = [8, 128], strides = [1, 1]} : vector<16x256xf32> to vector<8x128xf32>
    %64 = vector.extract_strided_slice %61 {offsets = [8, 0], sizes = [8, 128], strides = [1, 1]} : vector<16x256xf32> to vector<8x128xf32>
    %65 = vector.extract_strided_slice %61 {offsets = [8, 128], sizes = [8, 128], strides = [1, 1]} : vector<16x256xf32> to vector<8x128xf32>
    %66 = arith.mulf %62, %62 : vector<8x128xf32>
    %67 = arith.mulf %63, %63 : vector<8x128xf32>
    %68 = arith.addf %66, %67 : vector<8x128xf32>
    %cst_23 = arith.constant 1.000000e-30 : f32
    %69 = vector.broadcast %cst_23 : f32 to vector<8x128xf32>
    %70 = arith.addf %68, %69 : vector<8x128xf32>
    %71 = math.rsqrt %70 : vector<8x128xf32>
    %72 = arith.mulf %68, %71 : vector<8x128xf32>
    %73 = math.absf %64 : vector<8x128xf32>
    %74 = math.absf %65 : vector<8x128xf32>
    %75 = arith.maximumf %73, %74 : vector<8x128xf32>
    %76 = arith.minimumf %73, %74 : vector<8x128xf32>
    %cst_24 = arith.constant 1.000000e-30 : f32
    %77 = vector.broadcast %cst_24 : f32 to vector<8x128xf32>
    %78 = arith.maximumf %75, %77 : vector<8x128xf32>
    %79 = tpu.reciprocal %78 {approx = true} : vector<8x128xf32> -> vector<8x128xf32>
    %80 = arith.mulf %76, %79 : vector<8x128xf32>
    %81 = arith.mulf %80, %80 : vector<8x128xf32>
    %cst_25 = arith.constant 0.00282363896 : f32
    %82 = vector.broadcast %cst_25 : f32 to vector<8x128xf32>
    %83 = arith.mulf %82, %81 : vector<8x128xf32>
    %cst_26 = arith.constant -0.0159569029 : f32
    %84 = vector.broadcast %cst_26 : f32 to vector<8x128xf32>
    %85 = arith.addf %83, %84 : vector<8x128xf32>
    %86 = arith.mulf %85, %81 : vector<8x128xf32>
    %cst_27 = arith.constant 0.0425049886 : f32
    %87 = vector.broadcast %cst_27 : f32 to vector<8x128xf32>
    %88 = arith.addf %86, %87 : vector<8x128xf32>
    %89 = arith.mulf %88, %81 : vector<8x128xf32>
    %cst_28 = arith.constant -0.074890092 : f32
    %90 = vector.broadcast %cst_28 : f32 to vector<8x128xf32>
    %91 = arith.addf %89, %90 : vector<8x128xf32>
    %92 = arith.mulf %91, %81 : vector<8x128xf32>
    %cst_29 = arith.constant 0.106347933 : f32
    %93 = vector.broadcast %cst_29 : f32 to vector<8x128xf32>
    %94 = arith.addf %92, %93 : vector<8x128xf32>
    %95 = arith.mulf %94, %81 : vector<8x128xf32>
    %cst_30 = arith.constant -0.142027363 : f32
    %96 = vector.broadcast %cst_30 : f32 to vector<8x128xf32>
    %97 = arith.addf %95, %96 : vector<8x128xf32>
    %98 = arith.mulf %97, %81 : vector<8x128xf32>
    %cst_31 = arith.constant 0.199926957 : f32
    %99 = vector.broadcast %cst_31 : f32 to vector<8x128xf32>
    %100 = arith.addf %98, %99 : vector<8x128xf32>
    %101 = arith.mulf %100, %81 : vector<8x128xf32>
    %cst_32 = arith.constant -0.333331019 : f32
    %102 = vector.broadcast %cst_32 : f32 to vector<8x128xf32>
    %103 = arith.addf %101, %102 : vector<8x128xf32>
    %104 = arith.mulf %80, %81 : vector<8x128xf32>
    %105 = arith.mulf %104, %103 : vector<8x128xf32>
    %106 = arith.addf %80, %105 : vector<8x128xf32>
    %107 = arith.cmpf ogt, %74, %73 : vector<8x128xf32>
    %cst_33 = arith.constant 1.57079637 : f32
    %108 = vector.broadcast %cst_33 : f32 to vector<8x128xf32>
    %109 = arith.subf %108, %106 : vector<8x128xf32>
    %110 = arith.select %107, %109, %106 : vector<8x128xi1>, vector<8x128xf32>
    %cst_34 = arith.constant 0.000000e+00 : f32
    %111 = vector.broadcast %cst_34 : f32 to vector<8x128xf32>
    %112 = arith.cmpf olt, %64, %111 : vector<8x128xf32>
    %cst_35 = arith.constant 3.14159274 : f32
    %113 = vector.broadcast %cst_35 : f32 to vector<8x128xf32>
    %114 = arith.subf %113, %110 : vector<8x128xf32>
    %115 = arith.select %112, %114, %110 : vector<8x128xi1>, vector<8x128xf32>
    %cst_36 = arith.constant 0.000000e+00 : f32
    %116 = vector.broadcast %cst_36 : f32 to vector<8x128xf32>
    %117 = arith.cmpf olt, %65, %116 : vector<8x128xf32>
    %cst_37 = arith.constant 0.000000e+00 : f32
    %118 = vector.broadcast %cst_37 : f32 to vector<8x128xf32>
    %119 = arith.subf %118, %115 : vector<8x128xf32>
    %120 = arith.select %117, %119, %115 : vector<8x128xi1>, vector<8x128xf32>
    %121 = arith.truncf %72 : vector<8x128xf32> to vector<8x128xbf16>
    %c0_38 = arith.constant 0 : index
    %c0_39 = arith.constant 0 : index
    %122 = vector.load %arg6[%c0_38, %c0_39] : memref<128x128xbf16, #tpu.memory_space<vmem>>, vector<128x128xbf16>
    %cst_40 = arith.constant dense<0.000000e+00> : vector<8x128xf32>
    %123 = tpu.matmul %121, %122, %cst_40 {dimension_numbers = #tpu.dot_dimension_numbers<[1], [0], [0], [1], [0, 0, 1, 1], [], []>} : vector<8x128xbf16>, vector<128x128xbf16>, vector<8x128xf32> -> vector<8x128xf32>
    %c0_41 = arith.constant 0 : index
    %c0_42 = arith.constant 0 : index
    %124 = vector.load %arg7[%c0_41, %c0_42] : memref<1x128xf32, #tpu.memory_space<vmem>>, vector<1x128xf32>
    %125 = vector.broadcast %124 : vector<1x128xf32> to vector<8x128xf32>
    %126 = arith.addf %123, %125 : vector<8x128xf32>
    %127 = arith.truncf %120 : vector<8x128xf32> to vector<8x128xbf16>
    %c0_43 = arith.constant 0 : index
    %c0_44 = arith.constant 0 : index
    %128 = vector.load %arg8[%c0_43, %c0_44] : memref<128x256xbf16, #tpu.memory_space<vmem>>, vector<128x256xbf16>
    %cst_45 = arith.constant dense<0.000000e+00> : vector<8x256xf32>
    %129 = tpu.matmul %127, %128, %cst_45 {dimension_numbers = #tpu.dot_dimension_numbers<[1], [0], [0], [1], [0, 0, 1, 1], [], []>} : vector<8x128xbf16>, vector<128x256xbf16>, vector<8x256xf32> -> vector<8x256xf32>
    %c0_46 = arith.constant 0 : index
    %c0_47 = arith.constant 0 : index
    %130 = vector.load %arg9[%c0_46, %c0_47] : memref<1x256xf32, #tpu.memory_space<vmem>>, vector<1x256xf32>
    %131 = vector.broadcast %130 : vector<1x256xf32> to vector<8x256xf32>
    %132 = arith.addf %129, %131 : vector<8x256xf32>
    %133 = tpu.concatenate %126, %126 in 1 : vector<8x128xf32>, vector<8x128xf32> -> vector<8x256xf32>
    %134 = arith.mulf %133, %132 : vector<8x256xf32>
    %135 = arith.truncf %134 : vector<8x256xf32> to vector<8x256xbf16>
    %c0_48 = arith.constant 0 : index
    %c0_49 = arith.constant 0 : index
    %136 = vector.load %arg5[%c0_48, %c0_49] : memref<256x128xbf16, #tpu.memory_space<vmem>>, vector<256x128xbf16>
    %cst_50 = arith.constant dense<0.000000e+00> : vector<8x128xf32>
    %137 = tpu.matmul %135, %136, %cst_50 {dimension_numbers = #tpu.dot_dimension_numbers<[1], [0], [0], [1], [0, 0, 1, 1], [], []>} : vector<8x256xbf16>, vector<256x128xbf16>, vector<8x128xf32> -> vector<8x128xf32>
    %cst_51 = arith.constant 7.812500e-03 : f32
    %138 = vector.broadcast %cst_51 : f32 to vector<8x128xf32>
    %139 = arith.mulf %137, %138 : vector<8x128xf32>
    %140 = vector.broadcast %35 : vector<8x1xf32> to vector<8x128xf32>
    %141 = arith.mulf %139, %140 : vector<8x128xf32>
    %142 = vector.broadcast %27 : vector<8x1xf32> to vector<8x128xf32>
    %143 = arith.addf %141, %142 : vector<8x128xf32>
    %c0_52 = arith.constant 0 : index
    %c0_53 = arith.constant 0 : index
    %144 = vector.load %arg10[%c0_52, %c0_53] : memref<8x128xf32, #tpu.memory_space<vmem>>, vector<8x128xf32>
    tpu.vector_store %arg10[%c0_52, %c0_53], %143 {strides = array<i32>} : memref<8x128xf32, #tpu.memory_space<vmem>>, vector<8x128xf32>,
    return
  }
  func.func @transform_0(%arg0: i32) -> (i32, i32) {
    %c0_i32 = arith.constant 0 : i32
    %c0_i32_0 = arith.constant 0 : i32
    return %arg0, %c0_i32 : i32, i32
  }
  func.func @transform_1(%arg0: i32) -> (i32, i32) {
    %c0_i32 = arith.constant 0 : i32
    %c0_i32_0 = arith.constant 0 : i32
    return %arg0, %c0_i32 : i32, i32
  }
  func.func @transform_2(%arg0: i32) -> (i32, i32) {
    %c0_i32 = arith.constant 0 : i32
    %c0_i32_0 = arith.constant 0 : i32
    %c0_i32_1 = arith.constant 0 : i32
    return %c0_i32, %c0_i32_0 : i32, i32
  }
  func.func @transform_3(%arg0: i32) -> (i32, i32) {
    %c0_i32 = arith.constant 0 : i32
    %c0_i32_0 = arith.constant 0 : i32
    %c0_i32_1 = arith.constant 0 : i32
    return %c0_i32, %c0_i32_0 : i32, i32
  }
  func.func @transform_4(%arg0: i32) -> (i32, i32) {
    %c0_i32 = arith.constant 0 : i32
    %c0_i32_0 = arith.constant 0 : i32
    %c0_i32_1 = arith.constant 0 : i32
    return %c0_i32, %c0_i32_0 : i32, i32
  }
  func.func @transform_5(%arg0: i32) -> (i32, i32) {
    %c0_i32 = arith.constant 0 : i32
    %c0_i32_0 = arith.constant 0 : i32
    %c0_i32_1 = arith.constant 0 : i32
    return %c0_i32, %c0_i32_0 : i32, i32
  }
  func.func @transform_6(%arg0: i32) -> (i32, i32) {
    %c0_i32 = arith.constant 0 : i32
    %c0_i32_0 = arith.constant 0 : i32
    %c0_i32_1 = arith.constant 0 : i32
    return %c0_i32, %c0_i32_0 : i32, i32
  }
  func.func @transform_7(%arg0: i32) -> (i32, i32) {
    %c0_i32 = arith.constant 0 : i32
    %c0_i32_0 = arith.constant 0 : i32
    %c0_i32_1 = arith.constant 0 : i32
    return %c0_i32, %c0_i32_0 : i32, i32
  }
  func.func @transform_8(%arg0: i32) -> (i32, i32) {
    %c0_i32 = arith.constant 0 : i32
    %c0_i32_0 = arith.constant 0 : i32
    %c0_i32_1 = arith.constant 0 : i32
    return %c0_i32, %c0_i32_0 : i32, i32
  }
  func.func @transform_9(%arg0: i32) -> (i32, i32) {
    %c0_i32 = arith.constant 0 : i32
    %c0_i32_0 = arith.constant 0 : i32
    return %arg0, %c0_i32 : i32, i32
  }
}

</mosaic_0001>

<bundles_post_ra>
// kernel: tpu_custom_call.1
= control target key start
LH: loop header
LB: loop body
LE: loop exit
PB: predicated region body
PF: predicated region fallthrough
CT: control target
= control target key end

     0   :  { %14 = vsyncpa [#allocation3], 0  ;;  %s1553_s0 = inlined_call_operand.hbm [shape: f32[8,128], index: 0, kind: input, shape index: {}]   ;;  %s1554_s1 = inlined_call_operand.hbm [shape: f32[8,128], index: 1, kind: input, shape index: {}]   ;;  %s1555_s2 = inlined_call_operand.hbm [shape: bf16[128,128], index: 2, kind: input, shape index: {}]   ;;  %s1556_s3 = inlined_call_operand.hbm [shape: bf16[128,256], index: 3, kind: input, shape index: {}]   ;;  %s1557_s4 = inlined_call_operand.hbm [shape: bf16[256,128], index: 4, kind: input, shape index: {}]   ;;  %s1558_s5 = inlined_call_operand.hbm [shape: bf16[128,128], index: 5, kind: input, shape index: {}]   ;;  %s1559_s6 = inlined_call_operand.vmem [shape: f32[1,128], index: 6, kind: input, shape index: {}]   ;;  %s1560_s7 = inlined_call_operand.hbm [shape: bf16[128,256], index: 7, kind: input, shape index: {}]   ;;  %s1561_s8 = inlined_call_operand.vmem [shape: f32[1,256], index: 8, kind: input, shape index: {}]   ;;  %s1562_s9 = inlined_call_operand.hbm [shape: f32[8,128], index: 9, kind: output, shape index: {}]  }
   0x1   :  { %15 = vsyncpa [#allocation6], 0 }
   0x2   :  { %16 = vsyncpa [#allocation9], 0 }
   0x3   :  { %17 = vsyncpa [#allocation12], 0  ;;  %s35_s11 = sshll.u32 %s1554_s1, 4  ;;  %s36_s11 = int_to_ptr.hbm [resolvable:$true] %s35_s11 }
   0x4   :  { %18 = vsyncpa [#allocation4], 0  ;;  %s1404_s12 = smov [#allocation5]   ;;  %s58_s16 = sshll.u32 %s1556_s3, 4  ;;  %s59_s16 = int_to_ptr.hbm [resolvable:$true] %s58_s16 }
   0x5   :  { %s37_s13 = sshll.u32 %s1404_s12, 4  ;;  %s1405_s17 = smov [#allocation8]   ;;  %s38_s13 = int_to_ptr.vmem [resolvable:$true] %s37_s13 }
   0x6   :  { %40 = dma.hbm_to_vmem [thread:$0]  %s36_s11, 128, %s38_s13, [#allocation6]  }
   0x7   :  { %s60_s18 = sshll.u32 %s1405_s17, 4  ;;  %s1406_s19 = smov 128   ;;  %s61_s18 = int_to_ptr.vmem [resolvable:$true] %s60_s18 }
   0x8   :  { %s1407_s20 = smov 8   ;;  %s84_s22 = sshll.u32 %s1558_s5, 4  ;;  %s85_s22 = int_to_ptr.hbm [resolvable:$true] %s84_s22 }
   0x9   :  { %66 = dma.hbm_to_vmem [thread:$0]  %s59_s16, 2048, %s61_s18, [#allocation9], %s1406_s19, %s1406_s19, %s1407_s20  }
   0xa   :  { %s1408_s23 = smov [#allocation11]   ;;  %s24_s26 = sshll.u32 %s1553_s0, 4  ;;  %s25_s26 = int_to_ptr.hbm [resolvable:$true] %s24_s26 }
   0xb   :  { %s86_s24 = sshll.u32 %s1408_s23, 4  ;;  %s1409_s27 = smov 64   ;;  %s87_s24 = int_to_ptr.vmem [resolvable:$true] %s86_s24 }
   0xc   :  { %s1410_s28 = smov 4   ;;  %s1411_s29 = smov [#allocation2]  }
   0xd   :  { %92 = dma.hbm_to_vmem [thread:$0]  %s85_s22, 1024, %s87_s24, [#allocation12], %s1409_s27, %s1409_s27, %s1410_s28  }
   0xe   :  { %s26_s30 = sshll.u32 %s1411_s29, 4  ;;  %s45_s12 = sshll.u32 %s1555_s2, 4  ;;  %s27_s30 = int_to_ptr.vmem [resolvable:$true] %s26_s30  ;;  %s46_s12 = int_to_ptr.hbm [resolvable:$true] %s45_s12 }
   0xf   :  { %29 = dma.hbm_to_vmem [thread:$0]  %s25_s26, 128, %s27_s30, [#allocation3]  }
  0x10   :  { %s71_s14 = sshll.u32 %s1557_s4, 4  ;;  %s1412_s15 = smov [#allocation7]   ;;  %s72_s14 = int_to_ptr.hbm [resolvable:$true] %s71_s14 }
  0x11   :  { %s47_s16 = sshll.u32 %s1412_s15, 4  ;;  %s1413_s0 = smov [#allocation10]   ;;  %s48_s16 = int_to_ptr.vmem [resolvable:$true] %s47_s16 }
  0x12   :  { %53 = dma.hbm_to_vmem [thread:$0]  %s46_s12, 1024, %s48_s16, [#allocation6], %s1409_s27, %s1409_s27, %s1410_s28  }
  0x13   :  { %s73_s17 = sshll.u32 %s1413_s0, 4  ;;  %s99_s21 = sshll.u32 %s1560_s7, 4  ;;  %s74_s17 = int_to_ptr.vmem [resolvable:$true] %s73_s17  ;;  %s100_s21 = int_to_ptr.hbm [resolvable:$true] %s99_s21 }
  0x14   :  { %79 = dma.hbm_to_vmem [thread:$0]  %s72_s14, 2048, %s74_s17, [#allocation9], %s1409_s27, %s1409_s27, %s1410_s28  }
  0x15   :  { %s1414_s2 = smov [#allocation13]  }
  0x16   :  { %s101_s22 = sshll.u32 %s1414_s2, 4  ;;  %s102_s22 = int_to_ptr.vmem [resolvable:$true] %s101_s22 }
  0x17   :  { %107 = dma.hbm_to_vmem [thread:$0]  %s100_s21, 2048, %s102_s22, [#allocation12], %s1406_s19, %s1406_s19, %s1407_s20  }
  0x18   :  { %1394 = dma.done.wait [#allocation3], 128  }
  0x19   :  { %1395 = vsyncadd [#allocation3], 4294967168 }
  0x1a   :  { %1396 = dma.done.wait [#allocation6], 1152  }
  0x1b   :  { %1397 = vsyncadd [#allocation6], 4294966144 }
  0x1c   :  { %1398 = dma.done.wait [#allocation9], 4096  }
  0x1d   :  { %1399 = vsyncadd [#allocation9], 4294963200 }
  0x1e   :  { %1400 = dma.done.wait [#allocation12], 3072  }
  0x1f   :  { %1401 = vsyncadd [#allocation12], 4294964224  ;;  %v1115_v0 = vld [vmem:[#allocation7 + $0x38] sm:$0xff]  ;;  %v1114_v1 = vld [vmem:[#allocation7 + $0x30] sm:$0xff]  ;;  %v1415_v13 = vmov 128.0   ;;  %s839_s3 = sshll.u32 %s1562_s9, 4  ;;  %s840_s3 = int_to_ptr.hbm [resolvable:$true] %s839_s3 }
  0x20   :  { %205 = vmatpush.bf16.msra.mxu0 %v1115_v0  ;;  %v1113_v2 = vld [vmem:[#allocation7 + $0x28] sm:$0xff]  ;;  %v1112_v3 = vld [vmem:[#allocation7 + $0x20] sm:$0xff]  ;;  %v1111_v4 = vld [vmem:[#allocation7 + $0x18] sm:$0xff]  ;;  %1186 = vrcp.f32 %v1415_v13 }
  0x21   :  { %v1110_v5 = vld [vmem:[#allocation7 + $0x10] sm:$0xff]  ;;  %v1109_v6 = vld [vmem:[#allocation7 + $0x8] sm:$0xff]  ;;  %v1108_v7 = vld [vmem:[#allocation7] sm:$0xff] }
  0x22   :  { %v139_v8 = vld [vmem:[#allocation2] sm:$0xff]  ;;  %v138_v10 = vld [vmem:[#allocation5] sm:$0xff]  ;;  %v934_v47 = vld [vmem:[#allocation8 + $0x60] sm:$0xf] }
  0x23   :  { %v140_v9 = vpack.c.bf16 %v139_v8, %v139_v8  ;;  %239 = vadd.xlane.f32.xlu1 %v138_v10  ;;  %v942_v40 = vld [vmem:[#allocation8 + $0x70] sm:$0xf]  ;;  %v1131_v41 = vld [vmem:[#allocation8 + $0x74] sm:$0xf0]  ;;  %v1130_v42 = vld [vmem:[#allocation8 + $0x74] sm:$0xf] }
  0x24   :  { %206 = vmatpush.bf16.msra.mxu0 %v1114_v1  ;;  %v943_v43 = vor.u32 %v1131_v41, %v942_v40  ;;  %v944_v44 = vld [vmem:[#allocation8 + $0x78] sm:$0xf0]  ;;  %v1129_v48 = vld [vmem:[#allocation8 + $0x64] sm:$0xf0]  ;;  %v1128_v49 = vld [vmem:[#allocation8 + $0x64] sm:$0xf] }
  0x25   :  { %v947_v45 = vor.u32 %v1130_v42, %v944_v44  ;;  %v935_v50 = vor.u32 %v1129_v48, %v934_v47  ;;  %v936_v51 = vld [vmem:[#allocation8 + $0x68] sm:$0xf0]  ;;  %v926_v54 = vld [vmem:[#allocation8 + $0x50] sm:$0xf]  ;;  %v1127_v55 = vld [vmem:[#allocation8 + $0x54] sm:$0xf0] }
  0x26   :  { %v1187_v14 = vpop.eup %1186  ;;  %382 = vmatpush.bf16.msra.mxu1 %v943_v43  ;;  %v939_v53 = vor.u32 %v1128_v49, %v936_v51  ;;  %v1126_v56 = vld [vmem:[#allocation8 + $0x54] sm:$0xf]  ;;  %v927_v57 = vor.u32 %v1127_v55, %v926_v54  ;;  %v928_v58 = vld [vmem:[#allocation8 + $0x58] sm:$0xf0]  ;;  %v918_v59 = vld [vmem:[#allocation8 + $0x40] sm:$0xf] }
  0x27   :  { %v221_v15 = vmul.f32 128.0, %v1187_v14  ;;  %vm225_vm0 = vweird.f32 %v1187_v14  ;;  %396 = vmatpush.bf16.msra.mxu2 %v947_v45  ;;  %v1125_v60 = vld [vmem:[#allocation8 + $0x44] sm:$0xf0]  ;;  %v931_v61 = vor.u32 %v1126_v56, %v928_v58  ;;  %v1124_v62 = vld [vmem:[#allocation8 + $0x44] sm:$0xf]  ;;  %v1139_v58 = vld [vmem:[#allocation11 + $0x38] sm:$0xff] }
  0x28   :  { %207 = vmatpush.bf16.msra.mxu0 %v1113_v2  ;;  %v920_v63 = vld [vmem:[#allocation8 + $0x48] sm:$0xf0]  ;;  %v919_v0 = vor.u32 %v1125_v60, %v918_v59  ;;  %v910_v2 = vld [vmem:[#allocation8 + $0x30] sm:$0xf]  ;;  %528 = vmatpush.bf16.msra.mxu3 %v1139_v58 }
  0x29   :  { %v222_v16 = vsub.f32 1.0, %v221_v15  ;;  %v923_v1 = vor.u32 %v1124_v62, %v920_v63  ;;  %v1138_v59 = vld [vmem:[#allocation11 + $0x30] sm:$0xff]  ;;  %v1137_v60 = vld [vmem:[#allocation11 + $0x28] sm:$0xff]  ;;  %v1135_v62 = vld [vmem:[#allocation11 + $0x18] sm:$0xff] }
  0x2a   :  { %383 = vmatpush.bf16.msra.mxu1 %v935_v50  ;;  %v1134_v63 = vld [vmem:[#allocation11 + $0x10] sm:$0xff] }
  0x2b   :  { %v223_v17 = vmul.f32 %v1187_v14, %v222_v16  ;;  %397 = vmatpush.bf16.msra.mxu2 %v939_v53  ;;  %v894_v16 = vld [vmem:[#allocation8 + $0x10] sm:$0xf] }
  0x2c   :  { %208 = vmatpush.bf16.msra.mxu0 %v1112_v3  ;;  %v1123_v3 = vld [vmem:[#allocation8 + $0x34] sm:$0xf0]  ;;  %529 = vmatpush.bf16.msra.mxu3 %v1138_v59 }
  0x2d   :  { %v224_v18 = vadd.f32 %v1187_v14, %v223_v17  ;;  %v1119_v17 = vld [vmem:[#allocation8 + $0x14] sm:$0xf0] }
  0x2e   :  { %384 = vmatpush.bf16.msra.mxu1 %v927_v57 }
  0x2f   :  { %v226_v19 = vsel %vm225_vm0, %v1187_v14, %v224_v18  ;;  %398 = vmatpush.bf16.msra.mxu2 %v931_v61  ;;  %v1118_v18 = vld [vmem:[#allocation8 + $0x14] sm:$0xf]  ;;  %v1136_v61 = vld [vmem:[#allocation11 + $0x20] sm:$0xff] }
  0x30   :  { %209 = vmatpush.bf16.msra.mxu0 %v1111_v4  ;;  %v1122_v4 = vld [vmem:[#allocation8 + $0x34] sm:$0xf]  ;;  %530 = vmatpush.bf16.msra.mxu3 %v1137_v60 }
  0x32   :  { %385 = vmatpush.bf16.msra.mxu1 %v919_v0  ;;  %v1133_v0 = vld [vmem:[#allocation11 + $0x8] sm:$0xff] }
  0x33   :  { %399 = vmatpush.bf16.msra.mxu2 %v923_v1 }
  0x34   :  { %210 = vmatpush.bf16.msra.mxu0 %v1110_v5  ;;  %v912_v5 = vld [vmem:[#allocation8 + $0x38] sm:$0xf0]  ;;  %531 = vmatpush.bf16.msra.mxu3 %v1136_v61  ;;  %v1000_v61 = vld [vmem:[#allocation13 + $0x28] sm:$0xf0] }
  0x35   :  { %v915_v8 = vor.u32 %v1122_v4, %v912_v5  ;;  %v1038_v5 = vld [vmem:[#allocation13 + $0x70] sm:$0xf] }
  0x37   :  { %400 = vmatpush.bf16.msra.mxu2 %v915_v8  ;;  %v1040_v8 = vld [vmem:[#allocation13 + $0x78] sm:$0xf0] }
  0x38   :  { %211 = vmatpush.bf16.msra.mxu0 %v1109_v6  ;;  %v911_v6 = vor.u32 %v1123_v3, %v910_v2  ;;  %532 = vmatpush.bf16.msra.mxu3 %v1135_v62 }
  0x3a   :  { %386 = vmatpush.bf16.msra.mxu1 %v911_v6  ;;  %v1155_v6 = vld [vmem:[#allocation13 + $0x74] sm:$0xf0] }
  0x3c   :  { %212 = vmatpush.bf16.msra.mxu0 %v1108_v7  ;;  %533 = vmatpush.bf16.msra.mxu3 %v1134_v63 }
  0x3f   :  { %213 = vmatmul.bf16.vlgmr.msra.gmra.mxu0 %v140_v9  ;;  %v902_v9 = vld [vmem:[#allocation8 + $0x20] sm:$0xf] }
  0x40   :  { %534 = vmatpush.bf16.msra.mxu3 %v1133_v0 }
  0x96   :  { %v240_v20 = vpop.xlane.xlu1 %239 }
  0x97   :  { %v1494_v21 = vmul.f32 %v240_v20, %v226_v19  ;;  %v895_v20 = vor.u32 %v1119_v17, %v894_v16 }
  0x99   :  { %v1497_v22 = vsub.f32 %v138_v10, %v1494_v21  ;;  %v1121_v10 = vld [vmem:[#allocation8 + $0x24] sm:$0xf0] }
  0x9a   :  { %v903_v14 = vor.u32 %v1121_v10, %v902_v9  ;;  %v1039_v10 = vor.u32 %v1155_v6, %v1038_v5  ;;  %v992_v6 = vld [vmem:[#allocation13 + $0x18] sm:$0xf0] }
  0x9b   :  { %v243_v23 = vmul.f32 %v1497_v22, %v1497_v22 }
  0x9c   :  { %387 = vmatpush.bf16.msra.mxu1 %v903_v14  ;;  %644 = vmatpush.bf16.msrb.mxu0 %v1039_v10  ;;  %v1153_v14 = vld [vmem:[#allocation13 + $0x64] sm:$0xf0] }
  0x9d   :  { %244 = vadd.xlane.f32.xlu2 %v243_v23  ;;  %v1141_v10 = vld [vmem:[#allocation13 + $0x4] sm:$0xf0] }
  0xa0   :  { %388 = vmatpush.bf16.msra.mxu1 %v895_v20 }
  0xbc   :  { %v214_v11 = vpop.f32.mrf.mxu0 }
  0xbd   :  { %218 = vadd.xlane.f32.xlu0 %v214_v11 }
  0xc4   :  { %v216_v12 = vpop.f32.mrf.mxu0 }
  0xc5   :  { %v904_v12 = vld [vmem:[#allocation8 + $0x28] sm:$0xf0] }
 0x110   :  { %v245_v46 = vpop.xlane.xlu2 %244 }
 0x111   :  { %v1505_v52 = vmul.f32 0.007874016, %v245_v46 }
 0x113   :  { %vm254_vm1 = vcmp.eq.f32.partialorder %v1505_v52, inf  ;;  %v257_v41 = vand.u32 2147483648, %v1505_v52  ;;  %vm256_vm2 = vcmp.eq.f32.partialorder %v1505_v52, 0.0 }
 0x130   :  { %v219_v24 = vpop.xlane.xlu0 %218 }
 0x131   :  { %v227_v25 = vmul.f32 %v226_v19, %v219_v24 }
 0x133   :  { %v228_v26 = vsub.f32 %v214_v11, %v227_v25  ;;  %v886_v25 = vld [vmem:[#allocation8] sm:$0xf] }
 0x135   :  { %v229_v27 = vand.u32 2147483647, %v228_v26 }
 0x137   :  { %230 = vmax.xlane.f32.xlu0 %v229_v27 }
 0x1aa   :  { %v231_v28 = vpop.xlane.xlu0 %230 }
 0x1ab   :  { %v232_v29 = vadd.f32 1e-06, %v231_v28  ;;  %v888_v28 = vld [vmem:[#allocation8 + $0x8] sm:$0xf0] }
 0x1ad   :  { %1188 = vrcp.f32 %v232_v29 }
 0x1ae   :  { %1190 = vrsqrt.f32 %v1505_v52 }
 0x1b3   :  { %v1189_v30 = vpop.eup %1188 }
 0x1b4   :  { %v234_v31 = vmul.f32 1.5, %v1189_v30  ;;  %v1191_v7 = vpop.eup %1190 }
 0x1b5   :  { %v248_v13 = vmul.f32 %v1191_v7, %v1505_v52 }
 0x1b6   :  { %v235_v32 = vmul.f32 %v234_v31, %v229_v27  ;;  %v1116_v27 = vld [vmem:[#allocation8 + $0x4] sm:$0xf] }
 0x1b7   :  { %v249_v23 = vmul.f32 %v1191_v7, %v248_v13  ;;  %v891_v31 = vor.u32 %v1116_v27, %v888_v28  ;;  %v1030_v13 = vld [vmem:[#allocation13 + $0x60] sm:$0xf]  ;;  %v1150_v27 = vld [vmem:[#allocation13 + $0x54] sm:$0xf] }
 0x1b8   :  { %v236_v33 = vmul.f32 %v235_v32, %v235_v32  ;;  %v1031_v17 = vor.u32 %v1153_v14, %v1030_v13  ;;  %v984_v14 = vld [vmem:[#allocation13 + $0x8] sm:$0xf0] }
 0x1b9   :  { %v250_v30 = vmul.f32 0.5, %v249_v23 }
 0x1ba   :  { %v237_v34 = vmul.f32 %v236_v33, %v228_v26  ;;  %v1117_v26 = vld [vmem:[#allocation8 + $0x4] sm:$0xf0]  ;;  %645 = vmatpush.bf16.msrb.mxu0 %v1031_v17 }
 0x1bb   :  { %v887_v29 = vor.u32 %v1117_v26, %v886_v25  ;;  %v1022_v25 = vld [vmem:[#allocation13 + $0x50] sm:$0xf]  ;;  %v1151_v26 = vld [vmem:[#allocation13 + $0x54] sm:$0xf0] }
 0x1bc   :  { %v238_v35 = vadd.f32 %v237_v34, %v214_v11  ;;  %v1120_v11 = vld [vmem:[#allocation8 + $0x24] sm:$0xf]  ;;  %v251_v34 = vsub.f32 1.5, %v250_v30  ;;  %v1023_v28 = vor.u32 %v1151_v26, %v1022_v25 }
 0x1bd   :  { %v907_v15 = vor.u32 %v1120_v11, %v904_v12  ;;  %389 = vmatpush.bf16.msra.mxu1 %v887_v29  ;;  %v1024_v29 = vld [vmem:[#allocation13 + $0x58] sm:$0xf0] }
 0x1be   :  { %262 = vadd.xlane.f32.xlu1 %v238_v35  ;;  %646 = vmatpush.bf16.msrb.mxu0 %v1023_v28 }
 0x1bf   :  { %401 = vmatpush.bf16.msra.mxu2 %v907_v15  ;;  %v1152_v15 = vld [vmem:[#allocation13 + $0x64] sm:$0xf] }
 0x231   :  { %v263_v36 = vpop.xlane.xlu1 %262 }
 0x232   :  { %v264_v37 = vmul.f32 %v263_v36, %v226_v19  ;;  %v896_v19 = vld [vmem:[#allocation8 + $0x18] sm:$0xf0] }
 0x233   :  { %v899_v24 = vor.u32 %v1118_v18, %v896_v19  ;;  %v1032_v18 = vld [vmem:[#allocation13 + $0x68] sm:$0xf0] }
 0x234   :  { %v1501_v38 = vsub.f32 %v238_v35, %v264_v37  ;;  %v252_v35 = vmul.f32 %v1191_v7, %v251_v34  ;;  %v1154_v7 = vld [vmem:[#allocation13 + $0x74] sm:$0xf]  ;;  %v1035_v23 = vor.u32 %v1152_v15, %v1032_v18  ;;  %v1014_v34 = vld [vmem:[#allocation13 + $0x40] sm:$0xf] }
 0x235   :  { %402 = vmatpush.bf16.msra.mxu2 %v899_v24  ;;  %v1043_v11 = vor.u32 %v1154_v7, %v1040_v8 }
 0x236   :  { %v266_v39 = vmul.f32 %v1501_v38, %v1501_v38 }
 0x237   :  { %657 = vmatpush.bf16.msrb.mxu1 %v1043_v11  ;;  %v1140_v11 = vld [vmem:[#allocation13 + $0x4] sm:$0xf] }
 0x238   :  { %267 = vadd.xlane.f32.xlu2 %v266_v39  ;;  %v253_v39 = vmul.f32 %v252_v35, %v1505_v52  ;;  %v1149_v35 = vld [vmem:[#allocation13 + $0x44] sm:$0xf0]  ;;  %v987_v15 = vor.u32 %v1140_v11, %v984_v14 }
 0x239   :  { %403 = vmatpush.bf16.msra.mxu2 %v891_v31 }
 0x23a   :  { %v255_v42 = vsel %vm254_vm1, %v1505_v52, %v253_v39  ;;  %v1148_v39 = vld [vmem:[#allocation13 + $0x44] sm:$0xf] }
 0x23b   :  { %v1514_v45 = vsel %vm256_vm2, %v257_v41, %v255_v42  ;;  %658 = vmatpush.bf16.msrb.mxu1 %v1035_v23 }
 0x23c   :  { %v259_v47 = vadd.f32 1e-08, %v1514_v45 }
 0x2ab   :  { %v268_v32 = vpop.xlane.xlu2 %267 }
 0x2ac   :  { %v269_v33 = vmul.f32 0.007874016, %v268_v32  ;;  %v1027_v32 = vor.u32 %v1150_v27, %v1024_v29 }
 0x2ae   :  { %1192 = vrsqrt.f32 %v269_v33  ;;  %vm277_vm3 = vcmp.eq.f32.partialorder %v269_v33, inf  ;;  %v280_v49 = vand.u32 2147483648, %v269_v33  ;;  %vm279_vm4 = vcmp.eq.f32.partialorder %v269_v33, 0.0  ;;  %659 = vmatpush.bf16.msrb.mxu1 %v1027_v32 }
 0x2af   :  { %1194 = vrcp.f32 %v259_v47 }
 0x2b4   :  { %v1193_v36 = vpop.eup %1192 }
 0x2b5   :  { %v271_v37 = vmul.f32 %v1193_v36, %v269_v33  ;;  %v1195_v54 = vpop.eup %1194 }
 0x2b6   :  { %v261_v52 = vmul.f32 %v1195_v54, %v1497_v22  ;;  %v1132_v22 = vld [vmem:[#allocation11] sm:$0xff] }
 0x2b7   :  { %v272_v40 = vmul.f32 %v1193_v36, %v271_v37  ;;  %535 = vmatpush.bf16.msra.mxu3 %v1132_v22  ;;  %v1015_v37 = vor.u32 %v1149_v35, %v1014_v34 }
 0x2b9   :  { %v273_v43 = vmul.f32 0.5, %v272_v40  ;;  %v1016_v40 = vld [vmem:[#allocation13 + $0x48] sm:$0xf0]  ;;  %647 = vmatpush.bf16.msrb.mxu0 %v1015_v37 }
 0x2ba   :  { %v1019_v41 = vor.u32 %v1148_v39, %v1016_v40 }
 0x2bb   :  { %v274_v44 = vsub.f32 1.5, %v273_v43  ;;  %v1006_v43 = vld [vmem:[#allocation13 + $0x30] sm:$0xf] }
 0x2bc   :  { %660 = vmatpush.bf16.msrb.mxu1 %v1019_v41 }
 0x2bd   :  { %v275_v46 = vmul.f32 %v1193_v36, %v274_v44  ;;  %v1147_v44 = vld [vmem:[#allocation13 + $0x34] sm:$0xf0] }
 0x2bf   :  { %v276_v48 = vmul.f32 %v275_v46, %v269_v33  ;;  %v1146_v46 = vld [vmem:[#allocation13 + $0x34] sm:$0xf] }
 0x2c1   :  { %v278_v50 = vsel %vm277_vm3, %v269_v33, %v276_v48 }
 0x2c2   :  { %v281_v51 = vsel %vm279_vm4, %v280_v49, %v278_v50  ;;  %v1007_v49 = vor.u32 %v1147_v44, %v1006_v43  ;;  %v1008_v50 = vld [vmem:[#allocation13 + $0x38] sm:$0xf0]  ;;  %v1162_v44 = vld [vmem:[#allocation10 + $0x30] sm:$0xff] }
 0x2c3   :  { %v282_v53 = vadd.f32 1e-08, %v281_v51  ;;  %v1171_v43 = vld [vmem:[#allocation10 + $0x78] sm:$0xff] }
 0x2c4   :  { %648 = vmatpush.bf16.msrb.mxu0 %v1007_v49  ;;  %815 = vmatpush.bf16.msrb.mxu3 %v1171_v43  ;;  %v1158_v49 = vld [vmem:[#allocation10 + $0x10] sm:$0xff] }
 0x2c5   :  { %1196 = vrcp.f32 %v282_v53  ;;  %v1011_v53 = vor.u32 %v1146_v46, %v1008_v50  ;;  %v1170_v46 = vld [vmem:[#allocation10 + $0x70] sm:$0xff] }
 0x2c6   :  { %v1166_v50 = vld [vmem:[#allocation10 + $0x50] sm:$0xff] }
 0x2c7   :  { %661 = vmatpush.bf16.msrb.mxu1 %v1011_v53  ;;  %v1157_v53 = vld [vmem:[#allocation10 + $0x8] sm:$0xff] }
 0x2c8   :  { %816 = vmatpush.bf16.msrb.mxu3 %v1170_v46 }
 0x2cb   :  { %v1197_v55 = vpop.eup %1196 }
 0x2cc   :  { %v284_v56 = vmul.f32 %v1197_v55, %v1501_v38 }
 0x2ce   :  { %v285_v57 = vpack.c.bf16 %v284_v56, %v261_v52  ;;  %v998_v52 = vld [vmem:[#allocation13 + $0x20] sm:$0xf]  ;;  %v1145_v56 = vld [vmem:[#allocation13 + $0x24] sm:$0xf0] }
 0x2cf   :  { %v999_v60 = vor.u32 %v1145_v56, %v998_v52  ;;  %v1164_v52 = vld [vmem:[#allocation10 + $0x40] sm:$0xff] }
 0x2d0   :  { %390 = vmatmul.bf16.vlgmr.msra.gmra.mxu1 %v285_v57  ;;  %404 = vmatmul.bf16.vlgmr.msra.gmra.mxu2 %v285_v57  ;;  %v1144_v57 = vld [vmem:[#allocation13 + $0x24] sm:$0xf] }
 0x2d1   :  { %v1003_v63 = vor.u32 %v1144_v57, %v1000_v61  ;;  %649 = vmatpush.bf16.msrb.mxu0 %v999_v60  ;;  %v558_v57 = vld [vmem:[%s1561_s8] sm:$0x3] }
 0x2d2   :  { %v561_v60 = vperm.slane %v558_v57, 1 }
 0x2d3   :  { %662 = vmatpush.bf16.msrb.mxu1 %v1003_v63 }
 0x34d   :  { %v391_v38 = vpop.f32.mrf.mxu1 }
 0x34e   :  { %v410_v2 = vmul.f32 %v391_v38, %v391_v38  ;;  %v990_v38 = vld [vmem:[#allocation13 + $0x10] sm:$0xf] }
 0x353   :  { %v405_v1 = vpop.f32.mrf.mxu2 }
 0x354   :  { %v411_v3 = vmul.f32 %v405_v1, %v405_v1  ;;  %v1143_v1 = vld [vmem:[#allocation13 + $0x14] sm:$0xf0] }
 0x355   :  { %v1522_v12 = vpop.f32.mrf.mxu1  ;;  %v991_v5 = vor.u32 %v1143_v1, %v990_v38 }
 0x356   :  { %v1519_v4 = vadd.f32 %v411_v3, %v410_v2  ;;  %v1527_v19 = vand.u32 2147483647, %v1522_v12  ;;  %v1142_v2 = vld [vmem:[#allocation13 + $0x14] sm:$0xf]  ;;  %vm453_vm9 = vcmp.lt.f32.partialorder %v1522_v12, 0.0  ;;  %v1160_v12 = vld [vmem:[#allocation10 + $0x20] sm:$0xff] }
 0x357   :  { %v995_v7 = vor.u32 %v1142_v2, %v992_v6  ;;  %650 = vmatpush.bf16.msrb.mxu0 %v991_v5 }
 0x358   :  { %v413_v9 = vadd.f32 1e-30, %v1519_v4 }
 0x359   :  { %663 = vmatpush.bf16.msrb.mxu1 %v995_v7 }
 0x35a   :  { %1198 = vrsqrt.f32 %v413_v9  ;;  %vm420_vm6 = vweird.f32 %v413_v9 }
 0x35b   :  { %v1524_v16 = vpop.f32.mrf.mxu2 }
 0x35c   :  { %v1530_v20 = vand.u32 2147483647, %v1524_v16  ;;  %vm456_vm10 = vcmp.lt.f32.partialorder %v1524_v16, 0.0  ;;  %v1159_v16 = vld [vmem:[#allocation10 + $0x18] sm:$0xff] }
 0x35d   :  { %664 = vmatpush.bf16.msrb.mxu1 %v987_v15 }
 0x35e   :  { %v427_v24 = vmax.f32 %v1527_v19, %v1530_v20  ;;  %v428_v47 = vmin.f32 %v1527_v19, %v1530_v20  ;;  %vm450_vm8 = vcmp.gt.f32.partialorder %v1530_v20, %v1527_v19  ;;  %v1161_v19 = vld [vmem:[#allocation10 + $0x28] sm:$0xff] }
 0x35f   :  { %v1169_v20 = vld [vmem:[#allocation10 + $0x68] sm:$0xff] }
 0x360   :  { %v1199_v30 = vpop.eup %1198  ;;  %v429_v31 = vmax.f32 %v427_v24, 1e-30  ;;  %817 = vmatpush.bf16.msrb.mxu3 %v1169_v20 }
 0x361   :  { %v415_v33 = vmul.f32 %v1199_v30, %v413_v9  ;;  %vm421_vm5 = vweird.f32 %v1199_v30  ;;  %v982_v9 = vld [vmem:[#allocation13] sm:$0xf] }
 0x362   :  { %1200 = vrcp.f32 %v429_v31  ;;  %vm422_vm7 = vmor %vm420_vm6, %vm421_vm5  ;;  %v983_v13 = vor.u32 %v1141_v10, %v982_v9 }
 0x363   :  { %v416_v36 = vmul.f32 %v1199_v30, %v415_v33 }
 0x364   :  { %651 = vmatpush.bf16.msrb.mxu0 %v983_v13 }
 0x365   :  { %v417_v42 = vmul.f32 0.5, %v416_v36 }
 0x367   :  { %v418_v48 = vsub.f32 1.5, %v417_v42  ;;  %v1163_v42 = vld [vmem:[#allocation10 + $0x38] sm:$0xff] }
 0x368   :  { %v1201_v51 = vpop.eup %1200  ;;  %802 = vmatpush.bf16.msrb.mxu2 %v1163_v42 }
 0x369   :  { %v431_v54 = vmul.f32 %v1201_v51, %v428_v47  ;;  %v419_v55 = vmul.f32 %v1199_v30, %v418_v48  ;;  %v1168_v47 = vld [vmem:[#allocation10 + $0x60] sm:$0xff]  ;;  %v1167_v48 = vld [vmem:[#allocation10 + $0x58] sm:$0xff] }
 0x36a   :  { %818 = vmatpush.bf16.msrb.mxu3 %v1168_v47 }
 0x36b   :  { %v432_v58 = vmul.f32 %v431_v54, %v431_v54  ;;  %v423_v59 = vsel %vm422_vm7, %v1199_v30, %v419_v55  ;;  %v1156_v55 = vld [vmem:[#allocation10] sm:$0xff] }
 0x36c   :  { %v424_v62 = vmul.f32 %v423_v59, %v1519_v4  ;;  %803 = vmatpush.bf16.msrb.mxu2 %v1162_v44  ;;  %v560_v59 = vperm.slane %v558_v57, 0 }
 0x36d   :  { %v433_v0 = vmul.f32 0.002823639, %v432_v58  ;;  %v447_v31 = vmul.f32 %v432_v58, %v431_v54 }
 0x36e   :  { %v459_v22 = vpack.c.bf16 %v424_v62, %v424_v62  ;;  %819 = vmatpush.bf16.msrb.mxu3 %v1167_v48 }
 0x36f   :  { %v434_v3 = vadd.f32 -0.015956903, %v433_v0 }
 0x370   :  { %536 = vmatmul.bf16.vlgmr.msra.gmra.mxu3 %v459_v22  ;;  %804 = vmatpush.bf16.msrb.mxu2 %v1161_v19 }
 0x371   :  { %v435_v8 = vmul.f32 %v434_v3, %v432_v58 }
 0x372   :  { %820 = vmatpush.bf16.msrb.mxu3 %v1166_v50 }
 0x373   :  { %v436_v4 = vadd.f32 0.04250499, %v435_v8 }
 0x374   :  { %805 = vmatpush.bf16.msrb.mxu2 %v1160_v12 }
 0x375   :  { %v437_v17 = vmul.f32 %v436_v4, %v432_v58 }
 0x377   :  { %v438_v18 = vadd.f32 -0.07489009, %v437_v17 }
 0x378   :  { %806 = vmatpush.bf16.msrb.mxu2 %v1159_v16 }
 0x379   :  { %v439_v23 = vmul.f32 %v438_v18, %v432_v58 }
 0x37b   :  { %v440_v24 = vadd.f32 0.10634793, %v439_v23 }
 0x37c   :  { %807 = vmatpush.bf16.msrb.mxu2 %v1158_v49 }
 0x37d   :  { %v441_v25 = vmul.f32 %v440_v24, %v432_v58 }
 0x37f   :  { %v442_v26 = vadd.f32 -0.14202736, %v441_v25 }
 0x380   :  { %808 = vmatpush.bf16.msrb.mxu2 %v1157_v53 }
 0x381   :  { %v443_v27 = vmul.f32 %v442_v26, %v432_v58 }
 0x383   :  { %v444_v28 = vadd.f32 0.19992696, %v443_v27 }
 0x384   :  { %809 = vmatpush.bf16.msrb.mxu2 %v1156_v55 }
 0x385   :  { %v445_v29 = vmul.f32 %v444_v28, %v432_v58  ;;  %v1185_v58 = vld [vmem:[%s1559_s6] ss:$0 sm:$0xff]  ;;  %s1416_s6 = smov [#allocation14]  }
 0x386   :  { %s837_s8 = sshll.u32 %s1416_s6, 4  ;;  %s838_s8 = int_to_ptr.vmem [resolvable:$true] %s837_s8 }
 0x387   :  { %v446_v30 = vadd.f32 -0.33333102, %v445_v29 }
 0x389   :  { %v448_v32 = vmul.f32 %v447_v31, %v446_v30 }
 0x38b   :  { %v449_v33 = vadd.f32 %v448_v32, %v431_v54  ;;  %v1165_v54 = vld [vmem:[#allocation10 + $0x48] sm:$0xff] }
 0x38c   :  { %821 = vmatpush.bf16.msrb.mxu3 %v1165_v54 }
 0x38d   :  { %v451_v34 = vsub.f32 1.5707964, %v449_v33 }
 0x38f   :  { %v452_v35 = vsel %vm450_vm8, %v451_v34, %v449_v33 }
 0x390   :  { %v454_v36 = vsub.f32 3.1415927, %v452_v35  ;;  %822 = vmatpush.bf16.msrb.mxu3 %v1164_v52 }
 0x392   :  { %v455_v37 = vsel %vm453_vm9, %v454_v36, %v452_v35 }
 0x393   :  { %v457_v39 = vsub.f32 0.0, %v455_v37 }
 0x395   :  { %v458_v40 = vsel %vm456_vm10, %v457_v39, %v455_v37 }
 0x396   :  { %v541_v41 = vpack.c.bf16 %v458_v40, %v458_v40 }
 0x398   :  { %652 = vmatmul.bf16.vlgmr.msrb.gmra.mxu0 %v541_v41  ;;  %665 = vmatmul.bf16.vlgmr.msrb.gmra.mxu1 %v541_v41 }
 0x3f3   :  { %v537_v51 = vpop.f32.mrf.mxu3 }
 0x3f4   :  { %v538_v63 = vadd.f32 %v1185_v58, %v537_v51 }
 0x3fb   :  { %v539_v56 = vpop.f32.mrf.mxu3 }
 0x415   :  { %v653_v61 = vpop.f32.mrf.mxu0  ;;  %v666_v62 = vpop.f32.mrf.mxu1 }
 0x416   :  { %v654_v0 = vadd.f32 %v653_v61, %v560_v59  ;;  %v667_v22 = vadd.f32 %v666_v62, %v561_v60 }
 0x418   :  { %v670_v38 = vmul.f32 %v654_v0, %v538_v63  ;;  %v671_v1 = vmul.f32 %v667_v22, %v538_v63 }
 0x41a   :  { %v672_v2 = vpack.c.bf16 %v670_v38, %v670_v38  ;;  %v673_v3 = vpack.c.bf16 %v671_v1, %v671_v1 }
 0x41c   :  { %810 = vmatmul.bf16.vlgmr.msrb.gmra.mxu2 %v672_v2  ;;  %823 = vmatmul.bf16.vlgmr.msrb.gmra.mxu3 %v673_v3 }
 0x41d   :  { %v655_v5 = vpop.f32.mrf.mxu0  ;;  %v668_v6 = vpop.f32.mrf.mxu1 }
 0x49f   :  { %v811_v7 = vpop.f32.mrf.mxu2  ;;  %v824_v8 = vpop.f32.mrf.mxu3 }
 0x4a0   :  { %v825_v9 = vadd.f32 %v824_v8, %v811_v7 }
 0x4a2   :  { %v828_v10 = vmul.f32 0.0078125, %v825_v9 }
 0x4a4   :  { %v829_v11 = vmul.f32 %v828_v10, %v1514_v45 }
 0x4a6   :  { %v830_v4 = vadd.f32 %v829_v11, %v1494_v21 }
 0x4a7   :  { %v813_v13 = vpop.f32.mrf.mxu2  ;;  %v826_v14 = vpop.f32.mrf.mxu3 }
 0x4a8   :  { %831 = vst [vmem:[#allocation14] sm:$0xff] %v830_v4 }
 0x4a9   :  { %842 = dma.vmem_to_hbm [thread:$0]  %s838_s8, 128, %s840_s3, [#allocation4]  }
 0x4aa   :  { %1402 = dma.done.wait [#allocation4], 128  }
 0x4ab   :  { %1403 = vsyncadd [#allocation4], 4294967168 }
 0x4ac   :  { %847 = vsyncpa [#allocation3], 1 }
 0x4ad   :  { %848 = vsyncpa [#allocation6], 1 }
 0x4ae   :  { %849 = vsyncpa [#allocation9], 1 }
 0x4af   :  { %850 = vsyncpa [#allocation12], 1 }
 0x4b0   :  { %851 = vsyncpa [#allocation4], 1 }

// kernel: tpu_custom_call.1
= control target key start
LH: loop header
LB: loop body
LE: loop exit
PB: predicated region body
PF: predicated region fallthrough
CT: control target
= control target key end

     0   :  { %14 = vsyncpa [#allocation3], 0  ;;  %s1553_s0 = inlined_call_operand.hbm [shape: f32[8,128], index: 0, kind: input, shape index: {}]   ;;  %s1554_s1 = inlined_call_operand.hbm [shape: f32[8,128], index: 1, kind: input, shape index: {}]   ;;  %s1555_s2 = inlined_call_operand.hbm [shape: bf16[128,128], index: 2, kind: input, shape index: {}]   ;;  %s1556_s3 = inlined_call_operand.hbm [shape: bf16[128,256], index: 3, kind: input, shape index: {}]   ;;  %s1557_s4 = inlined_call_operand.hbm [shape: bf16[256,128], index: 4, kind: input, shape index: {}]   ;;  %s1558_s5 = inlined_call_operand.hbm [shape: bf16[128,128], index: 5, kind: input, shape index: {}]   ;;  %s1559_s6 = inlined_call_operand.vmem [shape: f32[1,128], index: 6, kind: input, shape index: {}]   ;;  %s1560_s7 = inlined_call_operand.hbm [shape: bf16[128,256], index: 7, kind: input, shape index: {}]   ;;  %s1561_s8 = inlined_call_operand.vmem [shape: f32[1,256], index: 8, kind: input, shape index: {}]   ;;  %s1562_s9 = inlined_call_operand.hbm [shape: f32[8,128], index: 9, kind: output, shape index: {}]  }
   0x1   :  { %15 = vsyncpa [#allocation6], 0 }
   0x2   :  { %16 = vsyncpa [#allocation9], 0 }
   0x3   :  { %17 = vsyncpa [#allocation12], 0  ;;  %s35_s11 = sshll.u32 %s1554_s1, 4  ;;  %s36_s11 = int_to_ptr.hbm [resolvable:$true] %s35_s11 }
   0x4   :  { %18 = vsyncpa [#allocation4], 0  ;;  %s1404_s12 = smov [#allocation5]   ;;  %s58_s16 = sshll.u32 %s1556_s3, 4  ;;  %s59_s16 = int_to_ptr.hbm [resolvable:$true] %s58_s16 }
   0x5   :  { %s37_s13 = sshll.u32 %s1404_s12, 4  ;;  %s1405_s17 = smov [#allocation8]   ;;  %s38_s13 = int_to_ptr.vmem [resolvable:$true] %s37_s13 }
   0x6   :  { %40 = dma.hbm_to_vmem [thread:$0]  %s36_s11, 128, %s38_s13, [#allocation6]  }
   0x7   :  { %s60_s18 = sshll.u32 %s1405_s17, 4  ;;  %s1406_s19 = smov 128   ;;  %s61_s18 = int_to_ptr.vmem [resolvable:$true] %s60_s18 }
   0x8   :  { %s1407_s20 = smov 8   ;;  %s84_s22 = sshll.u32 %s1558_s5, 4  ;;  %s85_s22 = int_to_ptr.hbm [resolvable:$true] %s84_s22 }
   0x9   :  { %66 = dma.hbm_to_vmem [thread:$0]  %s59_s16, 2048, %s61_s18, [#allocation9], %s1406_s19, %s1406_s19, %s1407_s20  }
   0xa   :  { %s1408_s23 = smov [#allocation11]   ;;  %s24_s26 = sshll.u32 %s1553_s0, 4  ;;  %s25_s26 = int_to_ptr.hbm [resolvable:$true] %s24_s26 }
   0xb   :  { %s86_s24 = sshll.u32 %s1408_s23, 4  ;;  %s1409_s27 = smov 64   ;;  %s87_s24 = int_to_ptr.vmem [resolvable:$true] %s86_s24 }
   0xc   :  { %s1410_s28 = smov 4   ;;  %s1411_s29 = smov [#allocation2]  }
   0xd   :  { %92 = dma.hbm_to_vmem [thread:$0]  %s85_s22, 1024, %s87_s24, [#allocation12], %s1409_s27, %s1409_s27, %s1410_s28  }
   0xe   :  { %s26_s30 = sshll.u32 %s1411_s29, 4  ;;  %s45_s12 = sshll.u32 %s1555_s2, 4  ;;  %s27_s30 = int_to_ptr.vmem [resolvable:$true] %s26_s30  ;;  %s46_s12 = int_to_ptr.hbm [resolvable:$true] %s45_s12 }
   0xf   :  { %29 = dma.hbm_to_vmem [thread:$0]  %s25_s26, 128, %s27_s30, [#allocation3]  }
  0x10   :  { %s71_s14 = sshll.u32 %s1557_s4, 4  ;;  %s1412_s15 = smov [#allocation7]   ;;  %s72_s14 = int_to_ptr.hbm [resolvable:$true] %s71_s14 }
  0x11   :  { %s47_s16 = sshll.u32 %s1412_s15, 4  ;;  %s1413_s0 = smov [#allocation10]   ;;  %s48_s16 = int_to_ptr.vmem [resolvable:$true] %s47_s16 }
  0x12   :  { %53 = dma.hbm_to_vmem [thread:$0]  %s46_s12, 1024, %s48_s16, [#allocation6], %s1409_s27, %s1409_s27, %s1410_s28  }
  0x13   :  { %s73_s17 = sshll.u32 %s1413_s0, 4  ;;  %s99_s21 = sshll.u32 %s1560_s7, 4  ;;  %s74_s17 = int_to_ptr.vmem [resolvable:$true] %s73_s17  ;;  %s100_s21 = int_to_ptr.hbm [resolvable:$true] %s99_s21 }
  0x14   :  { %79 = dma.hbm_to_vmem [thread:$0]  %s72_s14, 2048, %s74_s17, [#allocation9], %s1409_s27, %s1409_s27, %s1410_s28  }
  0x15   :  { %s1414_s2 = smov [#allocation13]  }
  0x16   :  { %s101_s22 = sshll.u32 %s1414_s2, 4  ;;  %s102_s22 = int_to_ptr.vmem [resolvable:$true] %s101_s22 }
  0x17   :  { %107 = dma.hbm_to_vmem [thread:$0]  %s100_s21, 2048, %s102_s22, [#allocation12], %s1406_s19, %s1406_s19, %s1407_s20  }
  0x18   :  { %1394 = dma.done.wait [#allocation3], 128  }
  0x19   :  { %1395 = vsyncadd [#allocation3], 4294967168 }
  0x1a   :  { %1396 = dma.done.wait [#allocation6], 1152  }
  0x1b   :  { %1397 = vsyncadd [#allocation6], 4294966144 }
  0x1c   :  { %1398 = dma.done.wait [#allocation9], 4096  }
  0x1d   :  { %1399 = vsyncadd [#allocation9], 4294963200 }
  0x1e   :  { %1400 = dma.done.wait [#allocation12], 3072  }
  0x1f   :  { %1401 = vsyncadd [#allocation12], 4294964224  ;;  %v1115_v0 = vld [vmem:[#allocation7 + $0x38] sm:$0xff]  ;;  %v1114_v1 = vld [vmem:[#allocation7 + $0x30] sm:$0xff]  ;;  %v1415_v13 = vmov 128.0   ;;  %s839_s3 = sshll.u32 %s1562_s9, 4  ;;  %s840_s3 = int_to_ptr.hbm [resolvable:$true] %s839_s3 }
  0x20   :  { %205 = vmatpush.bf16.msra.mxu0 %v1115_v0  ;;  %v1113_v2 = vld [vmem:[#allocation7 + $0x28] sm:$0xff]  ;;  %v1112_v3 = vld [vmem:[#allocation7 + $0x20] sm:$0xff]  ;;  %v1111_v4 = vld [vmem:[#allocation7 + $0x18] sm:$0xff]  ;;  %1186 = vrcp.f32 %v1415_v13 }
  0x21   :  { %v1110_v5 = vld [vmem:[#allocation7 + $0x10] sm:$0xff]  ;;  %v1109_v6 = vld [vmem:[#allocation7 + $0x8] sm:$0xff]  ;;  %v1108_v7 = vld [vmem:[#allocation7] sm:$0xff] }
  0x22   :  { %v139_v8 = vld [vmem:[#allocation2] sm:$0xff]  ;;  %v138_v10 = vld [vmem:[#allocation5] sm:$0xff]  ;;  %v934_v47 = vld [vmem:[#allocation8 + $0x60] sm:$0xf] }
  0x23   :  { %v140_v9 = vpack.c.bf16 %v139_v8, %v139_v8  ;;  %239 = vadd.xlane.f32.xlu1 %v138_v10  ;;  %v942_v40 = vld [vmem:[#allocation8 + $0x70] sm:$0xf]  ;;  %v1131_v41 = vld [vmem:[#allocation8 + $0x74] sm:$0xf0]  ;;  %v1130_v42 = vld [vmem:[#allocation8 + $0x74] sm:$0xf] }
  0x24   :  { %206 = vmatpush.bf16.msra.mxu0 %v1114_v1  ;;  %v943_v43 = vor.u32 %v1131_v41, %v942_v40  ;;  %v944_v44 = vld [vmem:[#allocation8 + $0x78] sm:$0xf0]  ;;  %v1129_v48 = vld [vmem:[#allocation8 + $0x64] sm:$0xf0]  ;;  %v1128_v49 = vld [vmem:[#allocation8 + $0x64] sm:$0xf] }
  0x25   :  { %v947_v45 = vor.u32 %v1130_v42, %v944_v44  ;;  %v935_v50 = vor.u32 %v1129_v48, %v934_v47  ;;  %v936_v51 = vld [vmem:[#allocation8 + $0x68] sm:$0xf0]  ;;  %v926_v54 = vld [vmem:[#allocation8 + $0x50] sm:$0xf]  ;;  %v1127_v55 = vld [vmem:[#allocation8 + $0x54] sm:$0xf0] }
  0x26   :  { %v1187_v14 = vpop.eup %1186  ;;  %382 = vmatpush.bf16.msra.mxu1 %v943_v43  ;;  %v939_v53 = vor.u32 %v1128_v49, %v936_v51  ;;  %v1126_v56 = vld [vmem:[#allocation8 + $0x54] sm:$0xf]  ;;  %v927_v57 = vor.u32 %v1127_v55, %v926_v54  ;;  %v928_v58 = vld [vmem:[#allocation8 + $0x58] sm:$0xf0]  ;;  %v918_v59 = vld [vmem:[#allocation8 + $0x40] sm:$0xf] }
  0x27   :  { %v221_v15 = vmul.f32 128.0, %v1187_v14  ;;  %vm225_vm0 = vweird.f32 %v1187_v14  ;;  %396 = vmatpush.bf16.msra.mxu2 %v947_v45  ;;  %v1125_v60 = vld [vmem:[#allocation8 + $0x44] sm:$0xf0]  ;;  %v931_v61 = vor.u32 %v1126_v56, %v928_v58  ;;  %v1124_v62 = vld [vmem:[#allocation8 + $0x44] sm:$0xf]  ;;  %v1139_v58 = vld [vmem:[#allocation11 + $0x38] sm:$0xff] }
  0x28   :  { %207 = vmatpush.bf16.msra.mxu0 %v1113_v2  ;;  %v920_v63 = vld [vmem:[#allocation8 + $0x48] sm:$0xf0]  ;;  %v919_v0 = vor.u32 %v1125_v60, %v918_v59  ;;  %v910_v2 = vld [vmem:[#allocation8 + $0x30] sm:$0xf]  ;;  %528 = vmatpush.bf16.msra.mxu3 %v1139_v58 }
  0x29   :  { %v222_v16 = vsub.f32 1.0, %v221_v15  ;;  %v923_v1 = vor.u32 %v1124_v62, %v920_v63  ;;  %v1138_v59 = vld [vmem:[#allocation11 + $0x30] sm:$0xff]  ;;  %v1137_v60 = vld [vmem:[#allocation11 + $0x28] sm:$0xff]  ;;  %v1135_v62 = vld [vmem:[#allocation11 + $0x18] sm:$0xff] }
  0x2a   :  { %383 = vmatpush.bf16.msra.mxu1 %v935_v50  ;;  %v1134_v63 = vld [vmem:[#allocation11 + $0x10] sm:$0xff] }
  0x2b   :  { %v223_v17 = vmul.f32 %v1187_v14, %v222_v16  ;;  %397 = vmatpush.bf16.msra.mxu2 %v939_v53  ;;  %v894_v16 = vld [vmem:[#allocation8 + $0x10] sm:$0xf] }
  0x2c   :  { %208 = vmatpush.bf16.msra.mxu0 %v1112_v3  ;;  %v1123_v3 = vld [vmem:[#allocation8 + $0x34] sm:$0xf0]  ;;  %529 = vmatpush.bf16.msra.mxu3 %v1138_v59 }
  0x2d   :  { %v224_v18 = vadd.f32 %v1187_v14, %v223_v17  ;;  %v1119_v17 = vld [vmem:[#allocation8 + $0x14] sm:$0xf0] }
  0x2e   :  { %384 = vmatpush.bf16.msra.mxu1 %v927_v57 }
  0x2f   :  { %v226_v19 = vsel %vm225_vm0, %v1187_v14, %v224_v18  ;;  %398 = vmatpush.bf16.msra.mxu2 %v931_v61  ;;  %v1118_v18 = vld [vmem:[#allocation8 + $0x14] sm:$0xf]  ;;  %v1136_v61 = vld [vmem:[#allocation11 + $0x20] sm:$0xff] }
  0x30   :  { %209 = vmatpush.bf16.msra.mxu0 %v1111_v4  ;;  %v1122_v4 = vld [vmem:[#allocation8 + $0x34] sm:$0xf]  ;;  %530 = vmatpush.bf16.msra.mxu3 %v1137_v60 }
  0x32   :  { %385 = vmatpush.bf16.msra.mxu1 %v919_v0  ;;  %v1133_v0 = vld [vmem:[#allocation11 + $0x8] sm:$0xff] }
  0x33   :  { %399 = vmatpush.bf16.msra.mxu2 %v923_v1 }
  0x34   :  { %210 = vmatpush.bf16.msra.mxu0 %v1110_v5  ;;  %v912_v5 = vld [vmem:[#allocation8 + $0x38] sm:$0xf0]  ;;  %531 = vmatpush.bf16.msra.mxu3 %v1136_v61  ;;  %v1000_v61 = vld [vmem:[#allocation13 + $0x28] sm:$0xf0] }
  0x35   :  { %v915_v8 = vor.u32 %v1122_v4, %v912_v5  ;;  %v1038_v5 = vld [vmem:[#allocation13 + $0x70] sm:$0xf] }
  0x37   :  { %400 = vmatpush.bf16.msra.mxu2 %v915_v8  ;;  %v1040_v8 = vld [vmem:[#allocation13 + $0x78] sm:$0xf0] }
  0x38   :  { %211 = vmatpush.bf16.msra.mxu0 %v1109_v6  ;;  %v911_v6 = vor.u32 %v1123_v3, %v910_v2  ;;  %532 = vmatpush.bf16.msra.mxu3 %v1135_v62 }
  0x3a   :  { %386 = vmatpush.bf16.msra.mxu1 %v911_v6  ;;  %v1155_v6 = vld [vmem:[#allocation13 + $0x74] sm:$0xf0] }
  0x3c   :  { %212 = vmatpush.bf16.msra.mxu0 %v1108_v7  ;;  %533 = vmatpush.bf16.msra.mxu3 %v1134_v63 }
  0x3f   :  { %213 = vmatmul.bf16.vlgmr.msra.gmra.mxu0 %v140_v9  ;;  %v902_v9 = vld [vmem:[#allocation8 + $0x20] sm:$0xf] }
  0x40   :  { %534 = vmatpush.bf16.msra.mxu3 %v1133_v0 }
  0x96   :  { %v240_v20 = vpop.xlane.xlu1 %239 }
  0x97   :  { %v1494_v21 = vmul.f32 %v240_v20, %v226_v19  ;;  %v895_v20 = vor.u32 %v1119_v17, %v894_v16 }
  0x99   :  { %v1497_v22 = vsub.f32 %v138_v10, %v1494_v21  ;;  %v1121_v10 = vld [vmem:[#allocation8 + $0x24] sm:$0xf0] }
  0x9a   :  { %v903_v14 = vor.u32 %v1121_v10, %v902_v9  ;;  %v1039_v10 = vor.u32 %v1155_v6, %v1038_v5  ;;  %v992_v6 = vld [vmem:[#allocation13 + $0x18] sm:$0xf0] }
  0x9b   :  { %v243_v23 = vmul.f32 %v1497_v22, %v1497_v22 }
  0x9c   :  { %387 = vmatpush.bf16.msra.mxu1 %v903_v14  ;;  %644 = vmatpush.bf16.msrb.mxu0 %v1039_v10  ;;  %v1153_v14 = vld [vmem:[#allocation13 + $0x64] sm:$0xf0] }
  0x9d   :  { %244 = vadd.xlane.f32.xlu2 %v243_v23  ;;  %v1141_v10 = vld [vmem:[#allocation13 + $0x4] sm:$0xf0] }
  0xa0   :  { %388 = vmatpush.bf16.msra.mxu1 %v895_v20 }
  0xbc   :  { %v214_v11 = vpop.f32.mrf.mxu0 }
  0xbd   :  { %218 = vadd.xlane.f32.xlu0 %v214_v11 }
  0xc4   :  { %v216_v12 = vpop.f32.mrf.mxu0 }
  0xc5   :  { %v904_v12 = vld [vmem:[#allocation8 + $0x28] sm:$0xf0] }
 0x110   :  { %v245_v46 = vpop.xlane.xlu2 %244 }
 0x111   :  { %v1505_v52 = vmul.f32 0.007874016, %v245_v46 }
 0x113   :  { %vm254_vm1 = vcmp.eq.f32.partialorder %v1505_v52, inf  ;;  %v257_v41 = vand.u32 2147483648, %v1505_v52  ;;  %vm256_vm2 = vcmp.eq.f32.partialorder %v1505_v52, 0.0 }
 0x130   :  { %v219_v24 = vpop.xlane.xlu0 %218 }
 0x131   :  { %v227_v25 = vmul.f32 %v226_v19, %v219_v24 }
 0x133   :  { %v228_v26 = vsub.f32 %v214_v11, %v227_v25  ;;  %v886_v25 = vld [vmem:[#allocation8] sm:$0xf] }
 0x135   :  { %v229_v27 = vand.u32 2147483647, %v228_v26 }
 0x137   :  { %230 = vmax.xlane.f32.xlu0 %v229_v27 }
 0x1aa   :  { %v231_v28 = vpop.xlane.xlu0 %230 }
 0x1ab   :  { %v232_v29 = vadd.f32 1e-06, %v231_v28  ;;  %v888_v28 = vld [vmem:[#allocation8 + $0x8] sm:$0xf0] }
 0x1ad   :  { %1188 = vrcp.f32 %v232_v29 }
 0x1ae   :  { %1190 = vrsqrt.f32 %v1505_v52 }
 0x1b3   :  { %v1189_v30 = vpop.eup %1188 }
 0x1b4   :  { %v234_v31 = vmul.f32 1.5, %v1189_v30  ;;  %v1191_v7 = vpop.eup %1190 }
 0x1b5   :  { %v248_v13 = vmul.f32 %v1191_v7, %v1505_v52 }
 0x1b6   :  { %v235_v32 = vmul.f32 %v234_v31, %v229_v27  ;;  %v1116_v27 = vld [vmem:[#allocation8 + $0x4] sm:$0xf] }
 0x1b7   :  { %v249_v23 = vmul.f32 %v1191_v7, %v248_v13  ;;  %v891_v31 = vor.u32 %v1116_v27, %v888_v28  ;;  %v1030_v13 = vld [vmem:[#allocation13 + $0x60] sm:$0xf]  ;;  %v1150_v27 = vld [vmem:[#allocation13 + $0x54] sm:$0xf] }
 0x1b8   :  { %v236_v33 = vmul.f32 %v235_v32, %v235_v32  ;;  %v1031_v17 = vor.u32 %v1153_v14, %v1030_v13  ;;  %v984_v14 = vld [vmem:[#allocation13 + $0x8] sm:$0xf0] }
 0x1b9   :  { %v250_v30 = vmul.f32 0.5, %v249_v23 }
 0x1ba   :  { %v237_v34 = vmul.f32 %v236_v33, %v228_v26  ;;  %v1117_v26 = vld [vmem:[#allocation8 + $0x4] sm:$0xf0]  ;;  %645 = vmatpush.bf16.msrb.mxu0 %v1031_v17 }
 0x1bb   :  { %v887_v29 = vor.u32 %v1117_v26, %v886_v25  ;;  %v1022_v25 = vld [vmem:[#allocation13 + $0x50] sm:$0xf]  ;;  %v1151_v26 = vld [vmem:[#allocation13 + $0x54] sm:$0xf0] }
 0x1bc   :  { %v238_v35 = vadd.f32 %v237_v34, %v214_v11  ;;  %v1120_v11 = vld [vmem:[#allocation8 + $0x24] sm:$0xf]  ;;  %v251_v34 = vsub.f32 1.5, %v250_v30  ;;  %v1023_v28 = vor.u32 %v1151_v26, %v1022_v25 }
 0x1bd   :  { %v907_v15 = vor.u32 %v1120_v11, %v904_v12  ;;  %389 = vmatpush.bf16.msra.mxu1 %v887_v29  ;;  %v1024_v29 = vld [vmem:[#allocation13 + $0x58] sm:$0xf0] }
 0x1be   :  { %262 = vadd.xlane.f32.xlu1 %v238_v35  ;;  %646 = vmatpush.bf16.msrb.mxu0 %v1023_v28 }
 0x1bf   :  { %401 = vmatpush.bf16.msra.mxu2 %v907_v15  ;;  %v1152_v15 = vld [vmem:[#allocation13 + $0x64] sm:$0xf] }
 0x231   :  { %v263_v36 = vpop.xlane.xlu1 %262 }
 0x232   :  { %v264_v37 = vmul.f32 %v263_v36, %v226_v19  ;;  %v896_v19 = vld [vmem:[#allocation8 + $0x18] sm:$0xf0] }
 0x233   :  { %v899_v24 = vor.u32 %v1118_v18, %v896_v19  ;;  %v1032_v18 = vld [vmem:[#allocation13 + $0x68] sm:$0xf0] }
 0x234   :  { %v1501_v38 = vsub.f32 %v238_v35, %v264_v37  ;;  %v252_v35 = vmul.f32 %v1191_v7, %v251_v34  ;;  %v1154_v7 = vld [vmem:[#allocation13 + $0x74] sm:$0xf]  ;;  %v1035_v23 = vor.u32 %v1152_v15, %v1032_v18  ;;  %v1014_v34 = vld [vmem:[#allocation13 + $0x40] sm:$0xf] }
 0x235   :  { %402 = vmatpush.bf16.msra.mxu2 %v899_v24  ;;  %v1043_v11 = vor.u32 %v1154_v7, %v1040_v8 }
 0x236   :  { %v266_v39 = vmul.f32 %v1501_v38, %v1501_v38 }
 0x237   :  { %657 = vmatpush.bf16.msrb.mxu1 %v1043_v11  ;;  %v1140_v11 = vld [vmem:[#allocation13 + $0x4] sm:$0xf] }
 0x238   :  { %267 = vadd.xlane.f32.xlu2 %v266_v39  ;;  %v253_v39 = vmul.f32 %v252_v35, %v1505_v52  ;;  %v1149_v35 = vld [vmem:[#allocation13 + $0x44] sm:$0xf0]  ;;  %v987_v15 = vor.u32 %v1140_v11, %v984_v14 }
 0x239   :  { %403 = vmatpush.bf16.msra.mxu2 %v891_v31 }
 0x23a   :  { %v255_v42 = vsel %vm254_vm1, %v1505_v52, %v253_v39  ;;  %v1148_v39 = vld [vmem:[#allocation13 + $0x44] sm:$0xf] }
 0x23b   :  { %v1514_v45 = vsel %vm256_vm2, %v257_v41, %v255_v42  ;;  %658 = vmatpush.bf16.msrb.mxu1 %v1035_v23 }
 0x23c   :  { %v259_v47 = vadd.f32 1e-08, %v1514_v45 }
 0x2ab   :  { %v268_v32 = vpop.xlane.xlu2 %267 }
 0x2ac   :  { %v269_v33 = vmul.f32 0.007874016, %v268_v32  ;;  %v1027_v32 = vor.u32 %v1150_v27, %v1024_v29 }
 0x2ae   :  { %1192 = vrsqrt.f32 %v269_v33  ;;  %vm277_vm3 = vcmp.eq.f32.partialorder %v269_v33, inf  ;;  %v280_v49 = vand.u32 2147483648, %v269_v33  ;;  %vm279_vm4 = vcmp.eq.f32.partialorder %v269_v33, 0.0  ;;  %659 = vmatpush.bf16.msrb.mxu1 %v1027_v32 }
 0x2af   :  { %1194 = vrcp.f32 %v259_v47 }
 0x2b4   :  { %v1193_v36 = vpop.eup %1192 }
 0x2b5   :  { %v271_v37 = vmul.f32 %v1193_v36, %v269_v33  ;;  %v1195_v54 = vpop.eup %1194 }
 0x2b6   :  { %v261_v52 = vmul.f32 %v1195_v54, %v1497_v22  ;;  %v1132_v22 = vld [vmem:[#allocation11] sm:$0xff] }
 0x2b7   :  { %v272_v40 = vmul.f32 %v1193_v36, %v271_v37  ;;  %535 = vmatpush.bf16.msra.mxu3 %v1132_v22  ;;  %v1015_v37 = vor.u32 %v1149_v35, %v1014_v34 }
 0x2b9   :  { %v273_v43 = vmul.f32 0.5, %v272_v40  ;;  %v1016_v40 = vld [vmem:[#allocation13 + $0x48] sm:$0xf0]  ;;  %647 = vmatpush.bf16.msrb.mxu0 %v1015_v37 }
 0x2ba   :  { %v1019_v41 = vor.u32 %v1148_v39, %v1016_v40 }
 0x2bb   :  { %v274_v44 = vsub.f32 1.5, %v273_v43  ;;  %v1006_v43 = vld [vmem:[#allocation13 + $0x30] sm:$0xf] }
 0x2bc   :  { %660 = vmatpush.bf16.msrb.mxu1 %v1019_v41 }
 0x2bd   :  { %v275_v46 = vmul.f32 %v1193_v36, %v274_v44  ;;  %v1147_v44 = vld [vmem:[#allocation13 + $0x34] sm:$0xf0] }
 0x2bf   :  { %v276_v48 = vmul.f32 %v275_v46, %v269_v33  ;;  %v1146_v46 = vld [vmem:[#allocation13 + $0x34] sm:$0xf] }
 0x2c1   :  { %v278_v50 = vsel %vm277_vm3, %v269_v33, %v276_v48 }
 0x2c2   :  { %v281_v51 = vsel %vm279_vm4, %v280_v49, %v278_v50  ;;  %v1007_v49 = vor.u32 %v1147_v44, %v1006_v43  ;;  %v1008_v50 = vld [vmem:[#allocation13 + $0x38] sm:$0xf0]  ;;  %v1162_v44 = vld [vmem:[#allocation10 + $0x30] sm:$0xff] }
 0x2c3   :  { %v282_v53 = vadd.f32 1e-08, %v281_v51  ;;  %v1171_v43 = vld [vmem:[#allocation10 + $0x78] sm:$0xff] }
 0x2c4   :  { %648 = vmatpush.bf16.msrb.mxu0 %v1007_v49  ;;  %815 = vmatpush.bf16.msrb.mxu3 %v1171_v43  ;;  %v1158_v49 = vld [vmem:[#allocation10 + $0x10] sm:$0xff] }
 0x2c5   :  { %1196 = vrcp.f32 %v282_v53  ;;  %v1011_v53 = vor.u32 %v1146_v46, %v1008_v50  ;;  %v1170_v46 = vld [vmem:[#allocation10 + $0x70] sm:$0xff] }
 0x2c6   :  { %v1166_v50 = vld [vmem:[#allocation10 + $0x50] sm:$0xff] }
 0x2c7   :  { %661 = vmatpush.bf16.msrb.mxu1 %v1011_v53  ;;  %v1157_v53 = vld [vmem:[#allocation10 + $0x8] sm:$0xff] }
 0x2c8   :  { %816 = vmatpush.bf16.msrb.mxu3 %v1170_v46 }
 0x2cb   :  { %v1197_v55 = vpop.eup %1196 }
 0x2cc   :  { %v284_v56 = vmul.f32 %v1197_v55, %v1501_v38 }
 0x2ce   :  { %v285_v57 = vpack.c.bf16 %v284_v56, %v261_v52  ;;  %v998_v52 = vld [vmem:[#allocation13 + $0x20] sm:$0xf]  ;;  %v1145_v56 = vld [vmem:[#allocation13 + $0x24] sm:$0xf0] }
 0x2cf   :  { %v999_v60 = vor.u32 %v1145_v56, %v998_v52  ;;  %v1164_v52 = vld [vmem:[#allocation10 + $0x40] sm:$0xff] }
 0x2d0   :  { %390 = vmatmul.bf16.vlgmr.msra.gmra.mxu1 %v285_v57  ;;  %404 = vmatmul.bf16.vlgmr.msra.gmra.mxu2 %v285_v57  ;;  %v1144_v57 = vld [vmem:[#allocation13 + $0x24] sm:$0xf] }
 0x2d1   :  { %v1003_v63 = vor.u32 %v1144_v57, %v1000_v61  ;;  %649 = vmatpush.bf16.msrb.mxu0 %v999_v60  ;;  %v558_v57 = vld [vmem:[%s1561_s8] sm:$0x3] }
 0x2d2   :  { %v561_v60 = vperm.slane %v558_v57, 1 }
 0x2d3   :  { %662 = vmatpush.bf16.msrb.mxu1 %v1003_v63 }
 0x34d   :  { %v391_v38 = vpop.f32.mrf.mxu1 }
 0x34e   :  { %v410_v2 = vmul.f32 %v391_v38, %v391_v38  ;;  %v990_v38 = vld [vmem:[#allocation13 + $0x10] sm:$0xf] }
 0x353   :  { %v405_v1 = vpop.f32.mrf.mxu2 }
 0x354   :  { %v411_v3 = vmul.f32 %v405_v1, %v405_v1  ;;  %v1143_v1 = vld [vmem:[#allocation13 + $0x14] sm:$0xf0] }
 0x355   :  { %v1522_v12 = vpop.f32.mrf.mxu1  ;;  %v991_v5 = vor.u32 %v1143_v1, %v990_v38 }
 0x356   :  { %v1519_v4 = vadd.f32 %v411_v3, %v410_v2  ;;  %v1527_v19 = vand.u32 2147483647, %v1522_v12  ;;  %v1142_v2 = vld [vmem:[#allocation13 + $0x14] sm:$0xf]  ;;  %vm453_vm9 = vcmp.lt.f32.partialorder %v1522_v12, 0.0  ;;  %v1160_v12 = vld [vmem:[#allocation10 + $0x20] sm:$0xff] }
 0x357   :  { %v995_v7 = vor.u32 %v1142_v2, %v992_v6  ;;  %650 = vmatpush.bf16.msrb.mxu0 %v991_v5 }
 0x358   :  { %v413_v9 = vadd.f32 1e-30, %v1519_v4 }
 0x359   :  { %663 = vmatpush.bf16.msrb.mxu1 %v995_v7 }
 0x35a   :  { %1198 = vrsqrt.f32 %v413_v9  ;;  %vm420_vm6 = vweird.f32 %v413_v9 }
 0x35b   :  { %v1524_v16 = vpop.f32.mrf.mxu2 }
 0x35c   :  { %v1530_v20 = vand.u32 2147483647, %v1524_v16  ;;  %vm456_vm10 = vcmp.lt.f32.partialorder %v1524_v16, 0.0  ;;  %v1159_v16 = vld [vmem:[#allocation10 + $0x18] sm:$0xff] }
 0x35d   :  { %664 = vmatpush.bf16.msrb.mxu1 %v987_v15 }
 0x35e   :  { %v427_v24 = vmax.f32 %v1527_v19, %v1530_v20  ;;  %v428_v47 = vmin.f32 %v1527_v19, %v1530_v20  ;;  %vm450_vm8 = vcmp.gt.f32.partialorder %v1530_v20, %v1527_v19  ;;  %v1161_v19 = vld [vmem:[#allocation10 + $0x28] sm:$0xff] }
 0x35f   :  { %v1169_v20 = vld [vmem:[#allocation10 + $0x68] sm:$0xff] }
 0x360   :  { %v1199_v30 = vpop.eup %1198  ;;  %v429_v31 = vmax.f32 %v427_v24, 1e-30  ;;  %817 = vmatpush.bf16.msrb.mxu3 %v1169_v20 }
 0x361   :  { %v415_v33 = vmul.f32 %v1199_v30, %v413_v9  ;;  %vm421_vm5 = vweird.f32 %v1199_v30  ;;  %v982_v9 = vld [vmem:[#allocation13] sm:$0xf] }
 0x362   :  { %1200 = vrcp.f32 %v429_v31  ;;  %vm422_vm7 = vmor %vm420_vm6, %vm421_vm5  ;;  %v983_v13 = vor.u32 %v1141_v10, %v982_v9 }
 0x363   :  { %v416_v36 = vmul.f32 %v1199_v30, %v415_v33 }
 0x364   :  { %651 = vmatpush.bf16.msrb.mxu0 %v983_v13 }
 0x365   :  { %v417_v42 = vmul.f32 0.5, %v416_v36 }
 0x367   :  { %v418_v48 = vsub.f32 1.5, %v417_v42  ;;  %v1163_v42 = vld [vmem:[#allocation10 + $0x38] sm:$0xff] }
 0x368   :  { %v1201_v51 = vpop.eup %1200  ;;  %802 = vmatpush.bf16.msrb.mxu2 %v1163_v42 }
 0x369   :  { %v431_v54 = vmul.f32 %v1201_v51, %v428_v47  ;;  %v419_v55 = vmul.f32 %v1199_v30, %v418_v48  ;;  %v1168_v47 = vld [vmem:[#allocation10 + $0x60] sm:$0xff]  ;;  %v1167_v48 = vld [vmem:[#allocation10 + $0x58] sm:$0xff] }
 0x36a   :  { %818 = vmatpush.bf16.msrb.mxu3 %v1168_v47 }
 0x36b   :  { %v432_v58 = vmul.f32 %v431_v54, %v431_v54  ;;  %v423_v59 = vsel %vm422_vm7, %v1199_v30, %v419_v55  ;;  %v1156_v55 = vld [vmem:[#allocation10] sm:$0xff] }
 0x36c   :  { %v424_v62 = vmul.f32 %v423_v59, %v1519_v4  ;;  %803 = vmatpush.bf16.msrb.mxu2 %v1162_v44  ;;  %v560_v59 = vperm.slane %v558_v57, 0 }
 0x36d   :  { %v433_v0 = vmul.f32 0.002823639, %v432_v58  ;;  %v447_v31 = vmul.f32 %v432_v58, %v431_v54 }
 0x36e   :  { %v459_v22 = vpack.c.bf16 %v424_v62, %v424_v62  ;;  %819 = vmatpush.bf16.msrb.mxu3 %v1167_v48 }
 0x36f   :  { %v434_v3 = vadd.f32 -0.015956903, %v433_v0 }
 0x370   :  { %536 = vmatmul.bf16.vlgmr.msra.gmra.mxu3 %v459_v22  ;;  %804 = vmatpush.bf16.msrb.mxu2 %v1161_v19 }
 0x371   :  { %v435_v8 = vmul.f32 %v434_v3, %v432_v58 }
 0x372   :  { %820 = vmatpush.bf16.msrb.mxu3 %v1166_v50 }
 0x373   :  { %v436_v4 = vadd.f32 0.04250499, %v435_v8 }
 0x374   :  { %805 = vmatpush.bf16.msrb.mxu2 %v1160_v12 }
 0x375   :  { %v437_v17 = vmul.f32 %v436_v4, %v432_v58 }
 0x377   :  { %v438_v18 = vadd.f32 -0.07489009, %v437_v17 }
 0x378   :  { %806 = vmatpush.bf16.msrb.mxu2 %v1159_v16 }
 0x379   :  { %v439_v23 = vmul.f32 %v438_v18, %v432_v58 }
 0x37b   :  { %v440_v24 = vadd.f32 0.10634793, %v439_v23 }
 0x37c   :  { %807 = vmatpush.bf16.msrb.mxu2 %v1158_v49 }
 0x37d   :  { %v441_v25 = vmul.f32 %v440_v24, %v432_v58 }
 0x37f   :  { %v442_v26 = vadd.f32 -0.14202736, %v441_v25 }
 0x380   :  { %808 = vmatpush.bf16.msrb.mxu2 %v1157_v53 }
 0x381   :  { %v443_v27 = vmul.f32 %v442_v26, %v432_v58 }
 0x383   :  { %v444_v28 = vadd.f32 0.19992696, %v443_v27 }
 0x384   :  { %809 = vmatpush.bf16.msrb.mxu2 %v1156_v55 }
 0x385   :  { %v445_v29 = vmul.f32 %v444_v28, %v432_v58  ;;  %v1185_v58 = vld [vmem:[%s1559_s6] ss:$0 sm:$0xff]  ;;  %s1416_s6 = smov [#allocation14]  }
 0x386   :  { %s837_s8 = sshll.u32 %s1416_s6, 4  ;;  %s838_s8 = int_to_ptr.vmem [resolvable:$true] %s837_s8 }
 0x387   :  { %v446_v30 = vadd.f32 -0.33333102, %v445_v29 }
 0x389   :  { %v448_v32 = vmul.f32 %v447_v31, %v446_v30 }
 0x38b   :  { %v449_v33 = vadd.f32 %v448_v32, %v431_v54  ;;  %v1165_v54 = vld [vmem:[#allocation10 + $0x48] sm:$0xff] }
 0x38c   :  { %821 = vmatpush.bf16.msrb.mxu3 %v1165_v54 }
 0x38d   :  { %v451_v34 = vsub.f32 1.5707964, %v449_v33 }
 0x38f   :  { %v452_v35 = vsel %vm450_vm8, %v451_v34, %v449_v33 }
 0x390   :  { %v454_v36 = vsub.f32 3.1415927, %v452_v35  ;;  %822 = vmatpush.bf16.msrb.mxu3 %v1164_v52 }
 0x392   :  { %v455_v37 = vsel %vm453_vm9, %v454_v36, %v452_v35 }
 0x393   :  { %v457_v39 = vsub.f32 0.0, %v455_v37 }
 0x395   :  { %v458_v40 = vsel %vm456_vm10, %v457_v39, %v455_v37 }
 0x396   :  { %v541_v41 = vpack.c.bf16 %v458_v40, %v458_v40 }
 0x398   :  { %652 = vmatmul.bf16.vlgmr.msrb.gmra.mxu0 %v541_v41  ;;  %665 = vmatmul.bf16.vlgmr.msrb.gmra.mxu1 %v541_v41 }
 0x3f3   :  { %v537_v51 = vpop.f32.mrf.mxu3 }
 0x3f4   :  { %v538_v63 = vadd.f32 %v1185_v58, %v537_v51 }
 0x3fb   :  { %v539_v56 = vpop.f32.mrf.mxu3 }
 0x415   :  { %v653_v61 = vpop.f32.mrf.mxu0  ;;  %v666_v62 = vpop.f32.mrf.mxu1 }
 0x416   :  { %v654_v0 = vadd.f32 %v653_v61, %v560_v59  ;;  %v667_v22 = vadd.f32 %v666_v62, %v561_v60 }
 0x418   :  { %v670_v38 = vmul.f32 %v654_v0, %v538_v63  ;;  %v671_v1 = vmul.f32 %v667_v22, %v538_v63 }
 0x41a   :  { %v672_v2 = vpack.c.bf16 %v670_v38, %v670_v38  ;;  %v673_v3 = vpack.c.bf16 %v671_v1, %v671_v1 }
 0x41c   :  { %810 = vmatmul.bf16.vlgmr.msrb.gmra.mxu2 %v672_v2  ;;  %823 = vmatmul.bf16.vlgmr.msrb.gmra.mxu3 %v673_v3 }
 0x41d   :  { %v655_v5 = vpop.f32.mrf.mxu0  ;;  %v668_v6 = vpop.f32.mrf.mxu1 }
 0x49f   :  { %v811_v7 = vpop.f32.mrf.mxu2  ;;  %v824_v8 = vpop.f32.mrf.mxu3 }
 0x4a0   :  { %v825_v9 = vadd.f32 %v824_v8, %v811_v7 }
 0x4a2   :  { %v828_v10 = vmul.f32 0.0078125, %v825_v9 }
 0x4a4   :  { %v829_v11 = vmul.f32 %v828_v10, %v1514_v45 }
 0x4a6   :  { %v830_v4 = vadd.f32 %v829_v11, %v1494_v21 }
 0x4a7   :  { %v813_v13 = vpop.f32.mrf.mxu2  ;;  %v826_v14 = vpop.f32.mrf.mxu3 }
 0x4a8   :  { %831 = vst [vmem:[#allocation14] sm:$0xff] %v830_v4 }
 0x4a9   :  { %842 = dma.vmem_to_hbm [thread:$0]  %s838_s8, 128, %s840_s3, [#allocation4]  }
 0x4aa   :  { %1402 = dma.done.wait [#allocation4], 128  }
 0x4ab   :  { %1403 = vsyncadd [#allocation4], 4294967168 }
 0x4ac   :  { %847 = vsyncpa [#allocation3], 1 }
 0x4ad   :  { %848 = vsyncpa [#allocation6], 1 }
 0x4ae   :  { %849 = vsyncpa [#allocation9], 1 }
 0x4af   :  { %850 = vsyncpa [#allocation12], 1 }
 0x4b0   :  { %851 = vsyncpa [#allocation4], 1 }

</bundles_post_ra>
